<compile_context>
chip_gen: v5e
topology: v5e:2x2
jax: 0.10.0
libtpu: 0.0.40
codegen_flags: <defaults>
</compile_context>

<pallas_src>
import functools

import numpy as np

import jax
import jax.numpy as jnp
from jax.experimental import pallas as pl
from jax.experimental.pallas import tpu as pltpu


# ----------------------------- fused kernel ---------------------------------


def _convnet_kernel(x_ref,
                    bs1_ref, b1_ref, bs2_ref, b2_ref, bs3_ref, b3_ref,
                    fw1_ref, fb1_ref, fw2_ref, fb2_ref, fw3_ref, fb3_ref,
                    out_ref, *, n_pool):
    """Whole ConvNet forward on a [block_m, Cin*H*W] row block, all in VMEM."""

    def conv_relu_pool(h, bs_ref, b_ref):
        # max over the pool^2 offset matrices == 2D max-pool of the conv output;
        # relu(max(z)+b) == max(relu(z+b)) since bias is constant per channel.
        acc = jnp.dot(h, bs_ref[0], preferred_element_type=jnp.float32)
        for a in range(1, n_pool):
            acc = jnp.maximum(
                acc, jnp.dot(h, bs_ref[a], preferred_element_type=jnp.float32))
        return jnp.maximum(acc + b_ref[...], 0.0)

    h = x_ref[...]                                   # [block_m, Cin*H*W]
    h = conv_relu_pool(h, bs1_ref, b1_ref)           # [block_m, C1*(H/2)^2]
    h = conv_relu_pool(h, bs2_ref, b2_ref)           # [block_m, C2*(H/4)^2]
    h = conv_relu_pool(h, bs3_ref, b3_ref)           # [block_m, convout_size]

    h = jnp.maximum(
        jnp.dot(h, fw1_ref[...], preferred_element_type=jnp.float32)
        + fb1_ref[...], 0.0)
    h = jnp.maximum(
        jnp.dot(h, fw2_ref[...], preferred_element_type=jnp.float32)
        + fb2_ref[...], 0.0)
    h = jnp.dot(h, fw3_ref[...], preferred_element_type=jnp.float32) + fb3_ref[...]
    out_ref[...] = h.astype(out_ref.dtype)


# --------------------- init-time weight preprocessing ------------------------


def _conv_pool_matrices(w_hwio, bias, h_in, w_in, pad, pool):
    """Fold conv2d (stride 1, zero pad) + pool x pool max-pool into matrices.

    Returns:
      mats:      [pool*pool, Cin*Hin*Win, Cout*Ho*Wo]  (one per pool offset)
      bias_flat: [1, Cout*Ho*Wo]
      h_o, w_o:  pooled output spatial size
    Rows are NCHW-flat input positions, columns NCHW-flat pooled-output
    positions, so chained layers (and the final fc1) compose with no transposes.
    One-time host-side preprocessing; zero runtime cost.
    """
    w = np.asarray(w_hwio, np.float32)
    k, _, cin, cout = w.shape
    h_c = h_in + 2 * pad - k + 1          # conv output spatial size
    w_c = w_in + 2 * pad - k + 1
    h_o, w_o = h_c // pool, w_c // pool   # after max-pool (floor, like F.max_pool2d)

    mats = np.zeros((pool * pool, cin * h_in * w_in, cout * h_o * w_o), np.float32)
    for a in range(pool):
        for b in range(pool):
            m = mats[a * pool + b]
            for co in range(cout):
                for ho in range(h_o):
                    hp = pool * ho + a            # pre-pool conv output row
                    for wo in range(w_o):
                        wp = pool * wo + b        # pre-pool conv output col
                        col = (co * h_o + ho) * w_o + wo
                        for ci in range(cin):
                            for kh in range(k):
                                hi = hp + kh - pad
                                if hi < 0 or hi >= h_in:
                                    continue
                                for kw in range(k):
                                    wi = wp + kw - pad
                                    if 0 <= wi < w_in:
                                        m[(ci * h_in + hi) * w_in + wi, col] = \
                                            w[kh, kw, ci, co]
    bias_flat = np.repeat(np.asarray(bias, np.float32), h_o * w_o)[None, :]
    return jnp.asarray(mats), jnp.asarray(bias_flat), h_o, w_o


def build_fused_params(params, patch_size, pool, pad):
    h = w = patch_size
    bs1, b1, h, w = _conv_pool_matrices(params["conv1_w"], params["conv1_b"], h, w, pad, pool)
    bs2, b2, h, w = _conv_pool_matrices(params["conv2_w"], params["conv2_b"], h, w, pad, pool)
    bs3, b3, h, w = _conv_pool_matrices(params["conv3_w"], params["conv3_b"], h, w, pad, pool)
    assert bs3.shape[2] == params["fc1_w"].shape[0], (bs3.shape, params["fc1_w"].shape)
    return (bs1, b1, bs2, b2, bs3, b3,
            params["fc1_w"], params["fc1_b"].reshape(1, -1),
            params["fc2_w"], params["fc2_b"].reshape(1, -1),
            params["fc3_w"], params["fc3_b"].reshape(1, -1))


# ------------------------------- wrapper -------------------------------------


def convnet_forward(fused, x_nchw, *, block_m=256):
    (bs1, b1, bs2, b2, bs3, b3, fw1, fb1, fw2, fb2, fw3, fb3) = fused
    n = x_nchw.shape[0]
    # NCHW flatten (contiguous reshape, no data movement); matches kernel layout.
    x_flat = x_nchw.reshape(n, -1).astype(jnp.float32)
    out_size = fw3.shape[1]
    consts = (bs1, b1, bs2, b2, bs3, b3, fw1, fb1, fw2, fb2, fw3, fb3)
    kernel = functools.partial(_convnet_kernel, n_pool=bs1.shape[0])

    flops = 2 * n * sum(int(a.size) for a in (bs1, bs2, bs3, fw1, fw2, fw3))
    bytes_accessed = 4 * (int(x_flat.size) + sum(int(a.size) for a in consts)
                          + n * int(out_size))
    cost = pl.CostEstimate(flops=flops, transcendentals=0,
                           bytes_accessed=bytes_accessed)
    out_shape = jax.ShapeDtypeStruct((n, out_size), jnp.float32)

    if n <= block_m:
        # Whole batch as one full-block call: no grid, no pipeline prologue.
        return pl.pallas_call(kernel, out_shape=out_shape,
                              cost_estimate=cost)(x_flat, *consts)

    # Scaled batch: tile rows; "parallel" lets v7x's 2 TensorCores split tiles
    # and keeps per-step VMEM bounded (weights stay resident, rows stream).
    def row_map(i):
        return (i, 0)

    in_specs = [pl.BlockSpec((block_m, x_flat.shape[1]), row_map)]
    for a in consts:
        if a.ndim == 3:
            in_specs.append(pl.BlockSpec(a.shape, lambda i: (0, 0, 0)))
        else:
            in_specs.append(pl.BlockSpec(a.shape, lambda i: (0, 0)))
    return pl.pallas_call(
        kernel,
        out_shape=out_shape,
        grid=(pl.cdiv(n, block_m),),
        in_specs=in_specs,
        out_specs=pl.BlockSpec((block_m, out_size), row_map),
        compiler_params=pltpu.CompilerParams(dimension_semantics=("parallel",)),
        cost_estimate=cost,
    )(x_flat, *consts)


# ------------------------------ params & reference ---------------------------


def init_params(key, c1_out, c2_out, c3_out, l1_out, l2_out, out_size,
                kernel_size, patch_size, pool_size):
    convout_size = int(c3_out * (patch_size / pool_size ** 3) ** 2)
    ks = jax.random.split(key, 12)

    def winit(k_, shape, fan_in):
        return jax.random.normal(k_, shape, jnp.float32) / jnp.sqrt(float(fan_in))

    k = kernel_size
    params = {
        "conv1_w": winit(ks[0], (k, k, 1, c1_out), k * k * 1),
        "conv1_b": winit(ks[1], (c1_out,), k * k * 1),
        "conv2_w": winit(ks[2], (k, k, c1_out, c2_out), k * k * c1_out),
        "conv2_b": winit(ks[3], (c2_out,), k * k * c1_out),
        "conv3_w": winit(ks[4], (k, k, c2_out, c3_out), k * k * c2_out),
        "conv3_b": winit(ks[5], (c3_out,), k * k * c2_out),
        "fc1_w": winit(ks[6], (convout_size, l1_out), convout_size),
        "fc1_b": winit(ks[7], (l1_out,), convout_size),
        "fc2_w": winit(ks[8], (l1_out, l2_out), l1_out),
        "fc2_b": winit(ks[9], (l2_out,), l1_out),
        "fc3_w": winit(ks[10], (l2_out, out_size), l2_out),
        "fc3_b": winit(ks[11], (out_size,), l2_out),
    }
    return params, convout_size


def reference_forward(params, x_nchw, pool, pad):
    """Plain-XLA reference mirroring the PyTorch forward (for validation)."""
    def conv_relu(x, w_hwio, b):
        w_oihw = jnp.transpose(w_hwio, (3, 2, 0, 1))
        y = jax.lax.conv_general_dilated(
            x, w_oihw, window_strides=(1, 1),
            padding=[(pad, pad), (pad, pad)],
            dimension_numbers=("NCHW", "OIHW", "NCHW"))
        return jax.nn.relu(y + b.reshape(1, -1, 1, 1))

    def max_pool(x, p):
        n, c, h, w = x.shape
        return jnp.max(x.reshape(n, c, h // p, p, w // p, p), axis=(3, 5))

    h = max_pool(conv_relu(x_nchw, params["conv1_w"], params["conv1_b"]), pool)
    h = max_pool(conv_relu(h, params["conv2_w"], params["conv2_b"]), pool)
    h = max_pool(conv_relu(h, params["conv3_w"], params["conv3_b"]), pool)
    h = h.reshape(h.shape[0], -1)                      # PyTorch NCHW .view order
    h = jax.nn.relu(h @ params["fc1_w"] + params["fc1_b"])
    h = jax.nn.relu(h @ params["fc2_w"] + params["fc2_b"])
    return h @ params["fc3_w"] + params["fc3_b"]


# --------------------------------- main ---------------------------------------


if __name__ == "__main__":
    # Small, shape-consistent configuration: 16 -> 8 -> 4 -> 2 after three pools.
    c1_out, c2_out, c3_out = 4, 8, 8
    l1_out, l2_out, out_size = 32, 16, 10
    kernel_size, patch_size, pool_size, pad = 3, 16, 2, 1
    batch = 2

    key = jax.random.PRNGKey(0)
    k_params, k_x = jax.random.split(key)
    params, convout_size = init_params(
        k_params, c1_out, c2_out, c3_out, l1_out, l2_out, out_size,
        kernel_size, patch_size, pool_size)
    fused = build_fused_params(params, patch_size, pool_size, pad)

    # Input matches nn.Conv2d(1, ...) NCHW convention: [N, 1, H, W]
    x = jax.random.normal(k_x, (batch, 1, patch_size, patch_size), jnp.float32)

    fwd = jax.jit(convnet_forward)
    out = jax.block_until_ready(fwd(fused, x))

    assert out.shape == (batch, out_size), out.shape
    assert bool(jnp.all(jnp.isfinite(out)))

    ref = jax.block_until_ready(reference_forward(params, x, pool_size, pad))
    np.testing.assert_allclose(np.asarray(out), np.asarray(ref),
                               rtol=2e-2, atol=2e-2)
    print("KERNEL_OK")
</pallas_src>

<mosaic_0001>
module attributes {stable_mosaic.version = 11 : i64} {
  func.func @_convnet_kernel(%arg0: memref<2x256xf32, #tpu.memory_space<vmem>>, %arg1: memref<4x256x256xf32, #tpu.memory_space<vmem>>, %arg2: memref<1x256xf32, #tpu.memory_space<vmem>>, %arg3: memref<4x256x128xf32, #tpu.memory_space<vmem>>, %arg4: memref<1x128xf32, #tpu.memory_space<vmem>>, %arg5: memref<4x128x32xf32, #tpu.memory_space<vmem>>, %arg6: memref<1x32xf32, #tpu.memory_space<vmem>>, %arg7: memref<32x32xf32, #tpu.memory_space<vmem>>, %arg8: memref<1x32xf32, #tpu.memory_space<vmem>>, %arg9: memref<32x16xf32, #tpu.memory_space<vmem>>, %arg10: memref<1x16xf32, #tpu.memory_space<vmem>>, %arg11: memref<16x10xf32, #tpu.memory_space<vmem>>, %arg12: memref<1x10xf32, #tpu.memory_space<vmem>>, %arg13: memref<2x10xf32, #tpu.memory_space<vmem>>) attributes {dimension_semantics = [], scalar_prefetch = 0 : i64, scratch_operands = 0 : i64, tpu.core_type = #tpu.core_type<tc>} {
    %c0 = arith.constant 0 : index
    %c0_0 = arith.constant 0 : index
    %0 = vector.load %arg0[%c0, %c0_0] : memref<2x256xf32, #tpu.memory_space<vmem>>, vector<2x256xf32>
    %c0_1 = arith.constant 0 : index
    %c0_2 = arith.constant 0 : index
    %c0_3 = arith.constant 0 : index
    %1 = vector.load %arg1[%c0_1, %c0_2, %c0_3] : memref<4x256x256xf32, #tpu.memory_space<vmem>>, vector<1x256x256xf32>
    %2 = vector.shape_cast %1 : vector<1x256x256xf32> to vector<256x256xf32>
    %cst = arith.constant dense<0.000000e+00> : vector<2x256xf32>
    %3 = tpu.matmul %0, %2, %cst {dimension_numbers = #tpu.dot_dimension_numbers<[1], [0], [0], [1], [0, 0, 1, 1], [], []>} : vector<2x256xf32>, vector<256x256xf32>, vector<2x256xf32> -> vector<2x256xf32>
    %c1 = arith.constant 1 : index
    %c0_4 = arith.constant 0 : index
    %c0_5 = arith.constant 0 : index
    %4 = vector.load %arg1[%c1, %c0_4, %c0_5] : memref<4x256x256xf32, #tpu.memory_space<vmem>>, vector<1x256x256xf32>
    %5 = vector.shape_cast %4 : vector<1x256x256xf32> to vector<256x256xf32>
    %cst_6 = arith.constant dense<0.000000e+00> : vector<2x256xf32>
    %6 = tpu.matmul %0, %5, %cst_6 {dimension_numbers = #tpu.dot_dimension_numbers<[1], [0], [0], [1], [0, 0, 1, 1], [], []>} : vector<2x256xf32>, vector<256x256xf32>, vector<2x256xf32> -> vector<2x256xf32>
    %7 = arith.maximumf %3, %6 : vector<2x256xf32>
    %c2 = arith.constant 2 : index
    %c0_7 = arith.constant 0 : index
    %c0_8 = arith.constant 0 : index
    %8 = vector.load %arg1[%c2, %c0_7, %c0_8] : memref<4x256x256xf32, #tpu.memory_space<vmem>>, vector<1x256x256xf32>
    %9 = vector.shape_cast %8 : vector<1x256x256xf32> to vector<256x256xf32>
    %cst_9 = arith.constant dense<0.000000e+00> : vector<2x256xf32>
    %10 = tpu.matmul %0, %9, %cst_9 {dimension_numbers = #tpu.dot_dimension_numbers<[1], [0], [0], [1], [0, 0, 1, 1], [], []>} : vector<2x256xf32>, vector<256x256xf32>, vector<2x256xf32> -> vector<2x256xf32>
    %11 = arith.maximumf %7, %10 : vector<2x256xf32>
    %c3 = arith.constant 3 : index
    %c0_10 = arith.constant 0 : index
    %c0_11 = arith.constant 0 : index
    %12 = vector.load %arg1[%c3, %c0_10, %c0_11] : memref<4x256x256xf32, #tpu.memory_space<vmem>>, vector<1x256x256xf32>
    %13 = vector.shape_cast %12 : vector<1x256x256xf32> to vector<256x256xf32>
    %cst_12 = arith.constant dense<0.000000e+00> : vector<2x256xf32>
    %14 = tpu.matmul %0, %13, %cst_12 {dimension_numbers = #tpu.dot_dimension_numbers<[1], [0], [0], [1], [0, 0, 1, 1], [], []>} : vector<2x256xf32>, vector<256x256xf32>, vector<2x256xf32> -> vector<2x256xf32>
    %15 = arith.maximumf %11, %14 : vector<2x256xf32>
    %c0_13 = arith.constant 0 : index
    %c0_14 = arith.constant 0 : index
    %16 = vector.load %arg2[%c0_13, %c0_14] : memref<1x256xf32, #tpu.memory_space<vmem>>, vector<1x256xf32>
    %17 = vector.broadcast %16 : vector<1x256xf32> to vector<2x256xf32>
    %18 = arith.addf %15, %17 : vector<2x256xf32>
    %cst_15 = arith.constant 0.000000e+00 : f32
    %19 = vector.broadcast %cst_15 : f32 to vector<2x256xf32>
    %20 = arith.maximumf %18, %19 : vector<2x256xf32>
    %c0_16 = arith.constant 0 : index
    %c0_17 = arith.constant 0 : index
    %c0_18 = arith.constant 0 : index
    %21 = vector.load %arg3[%c0_16, %c0_17, %c0_18] : memref<4x256x128xf32, #tpu.memory_space<vmem>>, vector<1x256x128xf32>
    %22 = vector.shape_cast %21 : vector<1x256x128xf32> to vector<256x128xf32>
    %cst_19 = arith.constant dense<0.000000e+00> : vector<2x128xf32>
    %23 = tpu.matmul %20, %22, %cst_19 {dimension_numbers = #tpu.dot_dimension_numbers<[1], [0], [0], [1], [0, 0, 1, 1], [], []>} : vector<2x256xf32>, vector<256x128xf32>, vector<2x128xf32> -> vector<2x128xf32>
    %c1_20 = arith.constant 1 : index
    %c0_21 = arith.constant 0 : index
    %c0_22 = arith.constant 0 : index
    %24 = vector.load %arg3[%c1_20, %c0_21, %c0_22] : memref<4x256x128xf32, #tpu.memory_space<vmem>>, vector<1x256x128xf32>
    %25 = vector.shape_cast %24 : vector<1x256x128xf32> to vector<256x128xf32>
    %cst_23 = arith.constant dense<0.000000e+00> : vector<2x128xf32>
    %26 = tpu.matmul %20, %25, %cst_23 {dimension_numbers = #tpu.dot_dimension_numbers<[1], [0], [0], [1], [0, 0, 1, 1], [], []>} : vector<2x256xf32>, vector<256x128xf32>, vector<2x128xf32> -> vector<2x128xf32>
    %27 = arith.maximumf %23, %26 : vector<2x128xf32>
    %c2_24 = arith.constant 2 : index
    %c0_25 = arith.constant 0 : index
    %c0_26 = arith.constant 0 : index
    %28 = vector.load %arg3[%c2_24, %c0_25, %c0_26] : memref<4x256x128xf32, #tpu.memory_space<vmem>>, vector<1x256x128xf32>
    %29 = vector.shape_cast %28 : vector<1x256x128xf32> to vector<256x128xf32>
    %cst_27 = arith.constant dense<0.000000e+00> : vector<2x128xf32>
    %30 = tpu.matmul %20, %29, %cst_27 {dimension_numbers = #tpu.dot_dimension_numbers<[1], [0], [0], [1], [0, 0, 1, 1], [], []>} : vector<2x256xf32>, vector<256x128xf32>, vector<2x128xf32> -> vector<2x128xf32>
    %31 = arith.maximumf %27, %30 : vector<2x128xf32>
    %c3_28 = arith.constant 3 : index
    %c0_29 = arith.constant 0 : index
    %c0_30 = arith.constant 0 : index
    %32 = vector.load %arg3[%c3_28, %c0_29, %c0_30] : memref<4x256x128xf32, #tpu.memory_space<vmem>>, vector<1x256x128xf32>
    %33 = vector.shape_cast %32 : vector<1x256x128xf32> to vector<256x128xf32>
    %cst_31 = arith.constant dense<0.000000e+00> : vector<2x128xf32>
    %34 = tpu.matmul %20, %33, %cst_31 {dimension_numbers = #tpu.dot_dimension_numbers<[1], [0], [0], [1], [0, 0, 1, 1], [], []>} : vector<2x256xf32>, vector<256x128xf32>, vector<2x128xf32> -> vector<2x128xf32>
    %35 = arith.maximumf %31, %34 : vector<2x128xf32>
    %c0_32 = arith.constant 0 : index
    %c0_33 = arith.constant 0 : index
    %36 = vector.load %arg4[%c0_32, %c0_33] : memref<1x128xf32, #tpu.memory_space<vmem>>, vector<1x128xf32>
    %37 = vector.broadcast %36 : vector<1x128xf32> to vector<2x128xf32>
    %38 = arith.addf %35, %37 : vector<2x128xf32>
    %cst_34 = arith.constant 0.000000e+00 : f32
    %39 = vector.broadcast %cst_34 : f32 to vector<2x128xf32>
    %40 = arith.maximumf %38, %39 : vector<2x128xf32>
    %c0_35 = arith.constant 0 : index
    %c0_36 = arith.constant 0 : index
    %c0_37 = arith.constant 0 : index
    %41 = vector.load %arg5[%c0_35, %c0_36, %c0_37] : memref<4x128x32xf32, #tpu.memory_space<vmem>>, vector<1x128x32xf32>
    %42 = vector.shape_cast %41 : vector<1x128x32xf32> to vector<128x32xf32>
    %cst_38 = arith.constant dense<0.000000e+00> : vector<2x32xf32>
    %43 = tpu.matmul %40, %42, %cst_38 {dimension_numbers = #tpu.dot_dimension_numbers<[1], [0], [0], [1], [0, 0, 1, 1], [], []>} : vector<2x128xf32>, vector<128x32xf32>, vector<2x32xf32> -> vector<2x32xf32>
    %c1_39 = arith.constant 1 : index
    %c0_40 = arith.constant 0 : index
    %c0_41 = arith.constant 0 : index
    %44 = vector.load %arg5[%c1_39, %c0_40, %c0_41] : memref<4x128x32xf32, #tpu.memory_space<vmem>>, vector<1x128x32xf32>
    %45 = vector.shape_cast %44 : vector<1x128x32xf32> to vector<128x32xf32>
    %cst_42 = arith.constant dense<0.000000e+00> : vector<2x32xf32>
    %46 = tpu.matmul %40, %45, %cst_42 {dimension_numbers = #tpu.dot_dimension_numbers<[1], [0], [0], [1], [0, 0, 1, 1], [], []>} : vector<2x128xf32>, vector<128x32xf32>, vector<2x32xf32> -> vector<2x32xf32>
    %47 = arith.maximumf %43, %46 : vector<2x32xf32>
    %c2_43 = arith.constant 2 : index
    %c0_44 = arith.constant 0 : index
    %c0_45 = arith.constant 0 : index
    %48 = vector.load %arg5[%c2_43, %c0_44, %c0_45] : memref<4x128x32xf32, #tpu.memory_space<vmem>>, vector<1x128x32xf32>
    %49 = vector.shape_cast %48 : vector<1x128x32xf32> to vector<128x32xf32>
    %cst_46 = arith.constant dense<0.000000e+00> : vector<2x32xf32>
    %50 = tpu.matmul %40, %49, %cst_46 {dimension_numbers = #tpu.dot_dimension_numbers<[1], [0], [0], [1], [0, 0, 1, 1], [], []>} : vector<2x128xf32>, vector<128x32xf32>, vector<2x32xf32> -> vector<2x32xf32>
    %51 = arith.maximumf %47, %50 : vector<2x32xf32>
    %c3_47 = arith.constant 3 : index
    %c0_48 = arith.constant 0 : index
    %c0_49 = arith.constant 0 : index
    %52 = vector.load %arg5[%c3_47, %c0_48, %c0_49] : memref<4x128x32xf32, #tpu.memory_space<vmem>>, vector<1x128x32xf32>
    %53 = vector.shape_cast %52 : vector<1x128x32xf32> to vector<128x32xf32>
    %cst_50 = arith.constant dense<0.000000e+00> : vector<2x32xf32>
    %54 = tpu.matmul %40, %53, %cst_50 {dimension_numbers = #tpu.dot_dimension_numbers<[1], [0], [0], [1], [0, 0, 1, 1], [], []>} : vector<2x128xf32>, vector<128x32xf32>, vector<2x32xf32> -> vector<2x32xf32>
    %55 = arith.maximumf %51, %54 : vector<2x32xf32>
    %c0_51 = arith.constant 0 : index
    %c0_52 = arith.constant 0 : index
    %56 = vector.load %arg6[%c0_51, %c0_52] : memref<1x32xf32, #tpu.memory_space<vmem>>, vector<1x32xf32>
    %57 = vector.broadcast %56 : vector<1x32xf32> to vector<2x32xf32>
    %58 = arith.addf %55, %57 : vector<2x32xf32>
    %cst_53 = arith.constant 0.000000e+00 : f32
    %59 = vector.broadcast %cst_53 : f32 to vector<2x32xf32>
    %60 = arith.maximumf %58, %59 : vector<2x32xf32>
    %c0_54 = arith.constant 0 : index
    %c0_55 = arith.constant 0 : index
    %61 = vector.load %arg7[%c0_54, %c0_55] : memref<32x32xf32, #tpu.memory_space<vmem>>, vector<32x32xf32>
    %cst_56 = arith.constant dense<0.000000e+00> : vector<2x32xf32>
    %62 = tpu.matmul %60, %61, %cst_56 {dimension_numbers = #tpu.dot_dimension_numbers<[1], [0], [0], [1], [0, 0, 1, 1], [], []>} : vector<2x32xf32>, vector<32x32xf32>, vector<2x32xf32> -> vector<2x32xf32>
    %c0_57 = arith.constant 0 : index
    %c0_58 = arith.constant 0 : index
    %63 = vector.load %arg8[%c0_57, %c0_58] : memref<1x32xf32, #tpu.memory_space<vmem>>, vector<1x32xf32>
    %64 = vector.broadcast %63 : vector<1x32xf32> to vector<2x32xf32>
    %65 = arith.addf %62, %64 : vector<2x32xf32>
    %cst_59 = arith.constant 0.000000e+00 : f32
    %66 = vector.broadcast %cst_59 : f32 to vector<2x32xf32>
    %67 = arith.maximumf %65, %66 : vector<2x32xf32>
    %c0_60 = arith.constant 0 : index
    %c0_61 = arith.constant 0 : index
    %68 = vector.load %arg9[%c0_60, %c0_61] : memref<32x16xf32, #tpu.memory_space<vmem>>, vector<32x16xf32>
    %cst_62 = arith.constant dense<0.000000e+00> : vector<2x16xf32>
    %69 = tpu.matmul %67, %68, %cst_62 {dimension_numbers = #tpu.dot_dimension_numbers<[1], [0], [0], [1], [0, 0, 1, 1], [], []>} : vector<2x32xf32>, vector<32x16xf32>, vector<2x16xf32> -> vector<2x16xf32>
    %c0_63 = arith.constant 0 : index
    %c0_64 = arith.constant 0 : index
    %70 = vector.load %arg10[%c0_63, %c0_64] : memref<1x16xf32, #tpu.memory_space<vmem>>, vector<1x16xf32>
    %71 = vector.broadcast %70 : vector<1x16xf32> to vector<2x16xf32>
    %72 = arith.addf %69, %71 : vector<2x16xf32>
    %cst_65 = arith.constant 0.000000e+00 : f32
    %73 = vector.broadcast %cst_65 : f32 to vector<2x16xf32>
    %74 = arith.maximumf %72, %73 : vector<2x16xf32>
    %c0_66 = arith.constant 0 : index
    %c0_67 = arith.constant 0 : index
    %75 = vector.load %arg11[%c0_66, %c0_67] : memref<16x10xf32, #tpu.memory_space<vmem>>, vector<16x10xf32>
    %cst_68 = arith.constant dense<0.000000e+00> : vector<2x10xf32>
    %76 = tpu.matmul %74, %75, %cst_68 {dimension_numbers = #tpu.dot_dimension_numbers<[1], [0], [0], [1], [0, 0, 1, 1], [], []>} : vector<2x16xf32>, vector<16x10xf32>, vector<2x10xf32> -> vector<2x10xf32>
    %c0_69 = arith.constant 0 : index
    %c0_70 = arith.constant 0 : index
    %77 = vector.load %arg12[%c0_69, %c0_70] : memref<1x10xf32, #tpu.memory_space<vmem>>, vector<1x10xf32>
    %78 = vector.broadcast %77 : vector<1x10xf32> to vector<2x10xf32>
    %79 = arith.addf %76, %78 : vector<2x10xf32>
    %c0_71 = arith.constant 0 : index
    %c0_72 = arith.constant 0 : index
    %80 = vector.load %arg13[%c0_71, %c0_72] : memref<2x10xf32, #tpu.memory_space<vmem>>, vector<2x10xf32>
    tpu.vector_store %arg13[%c0_71, %c0_72], %79 {strides = array<i32>} : memref<2x10xf32, #tpu.memory_space<vmem>>, vector<2x10xf32>,
    return
  }
}

</mosaic_0001>

<bundles_post_ra>
// kernel: convnet_forward.1
= control target key start
LH: loop header
LB: loop body
LE: loop exit
PB: predicated region body
PF: predicated region fallthrough
CT: control target
= control target key end

     0   :  { %18 = vsyncpa [#allocation3], 0  ;;  %s1771_s0 = inlined_call_operand.vmem [shape: f32[2,256], index: 0, kind: input, shape index: {}]   ;;  %s1772_s1 = inlined_call_operand.hbm [shape: f32[4,256,256], index: 1, kind: input, shape index: {}]   ;;  %s1773_s2 = inlined_call_operand.vmem [shape: f32[1,256], index: 2, kind: input, shape index: {}]   ;;  %s1774_s3 = inlined_call_operand.hbm [shape: f32[4,256,128], index: 3, kind: input, shape index: {}]   ;;  %s1775_s4 = inlined_call_operand.vmem [shape: f32[1,128], index: 4, kind: input, shape index: {}]   ;;  %s1776_s5 = inlined_call_operand.vmem [shape: f32[4,128,32], index: 5, kind: input, shape index: {}]   ;;  %s1777_s6 = inlined_call_operand.vmem [shape: f32[1,32], index: 6, kind: input, shape index: {}]   ;;  %s1778_s7 = inlined_call_operand.vmem [shape: f32[32,32], index: 7, kind: input, shape index: {}]   ;;  %s1779_s8 = inlined_call_operand.vmem [shape: f32[1,32], index: 8, kind: input, shape index: {}]   ;;  %s1780_s9 = inlined_call_operand.vmem [shape: f32[32,16], index: 9, kind: input, shape index: {}]   ;;  %s1781_s10 = inlined_call_operand.vmem [shape: f32[1,16], index: 10, kind: input, shape index: {}]   ;;  %s1782_s11 = inlined_call_operand.vmem [shape: f32[16,10], index: 11, kind: input, shape index: {}]   ;;  %s1783_s12 = inlined_call_operand.vmem [shape: f32[1,10], index: 12, kind: input, shape index: {}]   ;;  %s1784_s13 = inlined_call_operand.hbm [shape: f32[2,10], index: 13, kind: output, shape index: {}]  }
   0x1   :  { %19 = vsyncpa [#allocation6], 0 }
   0x2   :  { %20 = vsyncpa [#allocation4], 0  ;;  %s27_s27 = sshll.u32 %s1772_s1, 4  ;;  %s1406_s28 = smov [#allocation2]   ;;  %s28_s27 = int_to_ptr.hbm [resolvable:$true] %s27_s27 }
   0x3   :  { %s29_s29 = sshll.u32 %s1406_s28, 4  ;;  %s42_s15 = sshll.u32 %s1774_s3, 4  ;;  %s30_s29 = int_to_ptr.vmem [resolvable:$true] %s29_s29  ;;  %s43_s15 = int_to_ptr.hbm [resolvable:$true] %s42_s15 }
   0x4   :  { %s1407_s16 = smov 256   ;;  %s1408_s17 = smov 16  }
   0x5   :  { %35 = dma.hbm_to_vmem [thread:$0]  %s28_s27, 32768, %s30_s29, [#allocation3], %s1407_s16, %s1407_s16, %s1408_s17  }
   0x6   :  { %s1409_s18 = smov [#allocation5]   ;;  %s1410_s20 = smov 128  }
   0x7   :  { %s44_s19 = sshll.u32 %s1409_s18, 4  ;;  %s1411_s21 = smov 8   ;;  %s45_s19 = int_to_ptr.vmem [resolvable:$true] %s44_s19 }
   0x8   :  { %50 = dma.hbm_to_vmem [thread:$0]  %s43_s15, 16384, %s45_s19, [#allocation6], %s1410_s20, %s1410_s20, %s1411_s21  }
   0x9   :  { %1400 = dma.done.wait [#allocation3], 32768  }
   0xa   :  { %1401 = vsyncadd [#allocation3], 4294934528 }
   0xb   :  { %1402 = dma.done.wait [#allocation6], 16384  }
   0xc   :  { %1403 = vsyncadd [#allocation6], 4294950912  ;;  %v108_v0 = vld [vmem:[#allocation2 + $0xf0] sm:$0xff]  ;;  %v109_v2 = vld [vmem:[#allocation2 + $0xf8] sm:$0xff]  ;;  %vm1158_vm0 = vcmask 261120   ;;  %vm1221_vm1 = vcmask 130048  }
   0xd   :  { %v140_v1 = vld [vmem:[#allocation2 + $0x1f0] sm:$0xff]  ;;  %148 = vmatpush.msra.mxu0 %v108_v0  ;;  %v141_v3 = vld [vmem:[#allocation2 + $0x1f8] sm:$0xff]  ;;  %v106_v4 = vld [vmem:[#allocation2 + $0xe0] sm:$0xff]  ;;  %188 = vmatpush.msra.mxu2 %v109_v2  ;;  %s1412_s26 = smov [#allocation7]   ;;  %vm1245_vm2 = vcmask 74752  }
   0xe   :  { %168 = vmatpush.msra.mxu1 %v140_v1  ;;  %v138_v5 = vld [vmem:[#allocation2 + $0x1e0] sm:$0xff]  ;;  %208 = vmatpush.msra.mxu3 %v141_v3  ;;  %v107_v6 = vld [vmem:[#allocation2 + $0xe8] sm:$0xff]  ;;  %v104_v8 = vld [vmem:[#allocation2 + $0xd0] sm:$0xff]  ;;  %s1252_s27 = sshll.u32 %s1412_s26, 4  ;;  %s1253_s27 = int_to_ptr.vmem [resolvable:$true] %s1252_s27 }
   0xf   :  { %v139_v7 = vld [vmem:[#allocation2 + $0x1e8] sm:$0xff]  ;;  %149 = vmatpush.msra.mxu0 %v106_v4  ;;  %v136_v9 = vld [vmem:[#allocation2 + $0x1d0] sm:$0xff]  ;;  %v105_v10 = vld [vmem:[#allocation2 + $0xd8] sm:$0xff]  ;;  %189 = vmatpush.msra.mxu2 %v107_v6 }
  0x10   :  { %169 = vmatpush.msra.mxu1 %v138_v5  ;;  %v137_v11 = vld [vmem:[#allocation2 + $0x1d8] sm:$0xff]  ;;  %209 = vmatpush.msra.mxu3 %v139_v7  ;;  %v102_v12 = vld [vmem:[#allocation2 + $0xc0] sm:$0xff]  ;;  %v103_v14 = vld [vmem:[#allocation2 + $0xc8] sm:$0xff] }
  0x11   :  { %v134_v13 = vld [vmem:[#allocation2 + $0x1c0] sm:$0xff]  ;;  %150 = vmatpush.msra.mxu0 %v104_v8  ;;  %v135_v15 = vld [vmem:[#allocation2 + $0x1c8] sm:$0xff]  ;;  %190 = vmatpush.msra.mxu2 %v105_v10  ;;  %v100_v16 = vld [vmem:[#allocation2 + $0xb0] sm:$0xff] }
  0x12   :  { %170 = vmatpush.msra.mxu1 %v136_v9  ;;  %210 = vmatpush.msra.mxu3 %v137_v11  ;;  %v132_v17 = vld [vmem:[#allocation2 + $0x1b0] sm:$0xff]  ;;  %v101_v18 = vld [vmem:[#allocation2 + $0xb8] sm:$0xff]  ;;  %v98_v20 = vld [vmem:[#allocation2 + $0xa0] sm:$0xff] }
  0x13   :  { %151 = vmatpush.msra.mxu0 %v102_v12  ;;  %v133_v19 = vld [vmem:[#allocation2 + $0x1b8] sm:$0xff]  ;;  %191 = vmatpush.msra.mxu2 %v103_v14  ;;  %v130_v21 = vld [vmem:[#allocation2 + $0x1a0] sm:$0xff]  ;;  %v99_v22 = vld [vmem:[#allocation2 + $0xa8] sm:$0xff] }
  0x14   :  { %171 = vmatpush.msra.mxu1 %v134_v13  ;;  %211 = vmatpush.msra.mxu3 %v135_v15  ;;  %v131_v23 = vld [vmem:[#allocation2 + $0x1a8] sm:$0xff]  ;;  %v96_v24 = vld [vmem:[#allocation2 + $0x90] sm:$0xff]  ;;  %v97_v26 = vld [vmem:[#allocation2 + $0x98] sm:$0xff] }
  0x15   :  { %152 = vmatpush.msra.mxu0 %v100_v16  ;;  %192 = vmatpush.msra.mxu2 %v101_v18  ;;  %v128_v25 = vld [vmem:[#allocation2 + $0x190] sm:$0xff]  ;;  %v129_v27 = vld [vmem:[#allocation2 + $0x198] sm:$0xff]  ;;  %v94_v28 = vld [vmem:[#allocation2 + $0x80] sm:$0xff] }
  0x16   :  { %172 = vmatpush.msra.mxu1 %v132_v17  ;;  %212 = vmatpush.msra.mxu3 %v133_v19  ;;  %v126_v29 = vld [vmem:[#allocation2 + $0x180] sm:$0xff]  ;;  %v95_v30 = vld [vmem:[#allocation2 + $0x88] sm:$0xff]  ;;  %v92_v32 = vld [vmem:[#allocation2 + $0x70] sm:$0xff] }
  0x17   :  { %153 = vmatpush.msra.mxu0 %v98_v20  ;;  %193 = vmatpush.msra.mxu2 %v99_v22  ;;  %v127_v31 = vld [vmem:[#allocation2 + $0x188] sm:$0xff]  ;;  %v124_v33 = vld [vmem:[#allocation2 + $0x170] sm:$0xff]  ;;  %v93_v34 = vld [vmem:[#allocation2 + $0x78] sm:$0xff] }
  0x18   :  { %173 = vmatpush.msra.mxu1 %v130_v21  ;;  %213 = vmatpush.msra.mxu3 %v131_v23  ;;  %v125_v35 = vld [vmem:[#allocation2 + $0x178] sm:$0xff]  ;;  %v90_v36 = vld [vmem:[#allocation2 + $0x60] sm:$0xff]  ;;  %v91_v38 = vld [vmem:[#allocation2 + $0x68] sm:$0xff] }
  0x19   :  { %154 = vmatpush.msra.mxu0 %v96_v24  ;;  %194 = vmatpush.msra.mxu2 %v97_v26  ;;  %v122_v37 = vld [vmem:[#allocation2 + $0x160] sm:$0xff]  ;;  %v123_v39 = vld [vmem:[#allocation2 + $0x168] sm:$0xff]  ;;  %v88_v40 = vld [vmem:[#allocation2 + $0x50] sm:$0xff] }
  0x1a   :  { %174 = vmatpush.msra.mxu1 %v128_v25  ;;  %214 = vmatpush.msra.mxu3 %v129_v27  ;;  %v120_v41 = vld [vmem:[#allocation2 + $0x150] sm:$0xff]  ;;  %v89_v42 = vld [vmem:[#allocation2 + $0x58] sm:$0xff]  ;;  %v86_v44 = vld [vmem:[#allocation2 + $0x40] sm:$0xff] }
  0x1b   :  { %155 = vmatpush.msra.mxu0 %v94_v28  ;;  %195 = vmatpush.msra.mxu2 %v95_v30  ;;  %v121_v43 = vld [vmem:[#allocation2 + $0x158] sm:$0xff]  ;;  %v118_v45 = vld [vmem:[#allocation2 + $0x140] sm:$0xff]  ;;  %v87_v46 = vld [vmem:[#allocation2 + $0x48] sm:$0xff] }
  0x1c   :  { %175 = vmatpush.msra.mxu1 %v126_v29  ;;  %215 = vmatpush.msra.mxu3 %v127_v31  ;;  %v119_v47 = vld [vmem:[#allocation2 + $0x148] sm:$0xff]  ;;  %v84_v48 = vld [vmem:[#allocation2 + $0x30] sm:$0xff]  ;;  %v85_v50 = vld [vmem:[#allocation2 + $0x38] sm:$0xff] }
  0x1d   :  { %156 = vmatpush.msra.mxu0 %v92_v32  ;;  %196 = vmatpush.msra.mxu2 %v93_v34  ;;  %v116_v49 = vld [vmem:[#allocation2 + $0x130] sm:$0xff]  ;;  %v117_v51 = vld [vmem:[#allocation2 + $0x138] sm:$0xff]  ;;  %v82_v52 = vld [vmem:[#allocation2 + $0x20] sm:$0xff] }
  0x1e   :  { %176 = vmatpush.msra.mxu1 %v124_v33  ;;  %216 = vmatpush.msra.mxu3 %v125_v35  ;;  %v114_v53 = vld [vmem:[#allocation2 + $0x120] sm:$0xff]  ;;  %v83_v54 = vld [vmem:[#allocation2 + $0x28] sm:$0xff]  ;;  %v80_v56 = vld [vmem:[#allocation2 + $0x10] sm:$0xff] }
  0x1f   :  { %157 = vmatpush.msra.mxu0 %v90_v36  ;;  %197 = vmatpush.msra.mxu2 %v91_v38  ;;  %v115_v55 = vld [vmem:[#allocation2 + $0x128] sm:$0xff]  ;;  %v112_v57 = vld [vmem:[#allocation2 + $0x110] sm:$0xff]  ;;  %v81_v58 = vld [vmem:[#allocation2 + $0x18] sm:$0xff] }
  0x20   :  { %177 = vmatpush.msra.mxu1 %v122_v37  ;;  %217 = vmatpush.msra.mxu3 %v123_v39  ;;  %v113_v59 = vld [vmem:[#allocation2 + $0x118] sm:$0xff]  ;;  %v78_v60 = vld [vmem:[#allocation2] sm:$0xff]  ;;  %v79_v62 = vld [vmem:[#allocation2 + $0x8] sm:$0xff] }
  0x21   :  { %158 = vmatpush.msra.mxu0 %v88_v40  ;;  %198 = vmatpush.msra.mxu2 %v89_v42  ;;  %v110_v61 = vld [vmem:[#allocation2 + $0x100] sm:$0xff]  ;;  %v111_v63 = vld [vmem:[#allocation2 + $0x108] sm:$0xff]  ;;  %v259_v0 = vld [vmem:[#allocation2 + $0x2f0] sm:$0xff] }
  0x22   :  { %178 = vmatpush.msra.mxu1 %v120_v41  ;;  %218 = vmatpush.msra.mxu3 %v121_v43  ;;  %v291_v1 = vld [vmem:[#allocation2 + $0x3f0] sm:$0xff]  ;;  %v260_v2 = vld [vmem:[#allocation2 + $0x2f8] sm:$0xff]  ;;  %v257_v4 = vld [vmem:[#allocation2 + $0x2e0] sm:$0xff] }
  0x23   :  { %159 = vmatpush.msra.mxu0 %v86_v44  ;;  %199 = vmatpush.msra.mxu2 %v87_v46  ;;  %v292_v3 = vld [vmem:[#allocation2 + $0x3f8] sm:$0xff]  ;;  %v289_v5 = vld [vmem:[#allocation2 + $0x3e0] sm:$0xff]  ;;  %v258_v6 = vld [vmem:[#allocation2 + $0x2e8] sm:$0xff] }
  0x24   :  { %179 = vmatpush.msra.mxu1 %v118_v45  ;;  %219 = vmatpush.msra.mxu3 %v119_v47  ;;  %v290_v7 = vld [vmem:[#allocation2 + $0x3e8] sm:$0xff]  ;;  %v255_v8 = vld [vmem:[#allocation2 + $0x2d0] sm:$0xff]  ;;  %v256_v10 = vld [vmem:[#allocation2 + $0x2d8] sm:$0xff] }
  0x25   :  { %160 = vmatpush.msra.mxu0 %v84_v48  ;;  %200 = vmatpush.msra.mxu2 %v85_v50  ;;  %v287_v9 = vld [vmem:[#allocation2 + $0x3d0] sm:$0xff]  ;;  %v288_v11 = vld [vmem:[#allocation2 + $0x3d8] sm:$0xff]  ;;  %v253_v12 = vld [vmem:[#allocation2 + $0x2c0] sm:$0xff] }
  0x26   :  { %180 = vmatpush.msra.mxu1 %v116_v49  ;;  %220 = vmatpush.msra.mxu3 %v117_v51  ;;  %v285_v13 = vld [vmem:[#allocation2 + $0x3c0] sm:$0xff]  ;;  %v254_v14 = vld [vmem:[#allocation2 + $0x2c8] sm:$0xff]  ;;  %v1492_v16 = vld [vmem:[%s1771_s0] sm:$0xf] }
  0x27   :  { %161 = vmatpush.msra.mxu0 %v82_v52  ;;  %201 = vmatpush.msra.mxu2 %v83_v54  ;;  %v286_v15 = vld [vmem:[#allocation2 + $0x3c8] sm:$0xff]  ;;  %v251_v17 = vld [vmem:[#allocation2 + $0x2b0] sm:$0xff]  ;;  %143 = vst [vmem:[#allocation1] ss:$4 sm:$0xff] %v1492_v16  ;;  %v252_v19 = vld [vmem:[#allocation2 + $0x2b8] sm:$0xff] }
  0x28   :  { %181 = vmatpush.msra.mxu1 %v114_v53  ;;  %221 = vmatpush.msra.mxu3 %v115_v55  ;;  %v283_v18 = vld [vmem:[#allocation2 + $0x3b0] sm:$0xff]  ;;  %v284_v20 = vld [vmem:[#allocation2 + $0x3b8] sm:$0xff]  ;;  %v249_v21 = vld [vmem:[#allocation2 + $0x2a0] sm:$0xff] }
  0x29   :  { %162 = vmatpush.msra.mxu0 %v80_v56  ;;  %202 = vmatpush.msra.mxu2 %v81_v58  ;;  %v281_v22 = vld [vmem:[#allocation2 + $0x3a0] sm:$0xff]  ;;  %v250_v23 = vld [vmem:[#allocation2 + $0x2a8] sm:$0xff]  ;;  %v247_v25 = vld [vmem:[#allocation2 + $0x290] sm:$0xff] }
  0x2a   :  { %182 = vmatpush.msra.mxu1 %v112_v57  ;;  %222 = vmatpush.msra.mxu3 %v113_v59  ;;  %v282_v24 = vld [vmem:[#allocation2 + $0x3a8] sm:$0xff]  ;;  %v279_v26 = vld [vmem:[#allocation2 + $0x390] sm:$0xff]  ;;  %v248_v27 = vld [vmem:[#allocation2 + $0x298] sm:$0xff] }
  0x2b   :  { %163 = vmatpush.msra.mxu0 %v78_v60  ;;  %203 = vmatpush.msra.mxu2 %v79_v62  ;;  %v280_v28 = vld [vmem:[#allocation2 + $0x398] sm:$0xff]  ;;  %v245_v29 = vld [vmem:[#allocation2 + $0x280] sm:$0xff]  ;;  %v246_v31 = vld [vmem:[#allocation2 + $0x288] sm:$0xff] }
  0x2c   :  { %183 = vmatpush.msra.mxu1 %v110_v61  ;;  %223 = vmatpush.msra.mxu3 %v111_v63  ;;  %v277_v30 = vld [vmem:[#allocation2 + $0x380] sm:$0xff]  ;;  %v278_v32 = vld [vmem:[#allocation2 + $0x388] sm:$0xff]  ;;  %v243_v35 = vld [vmem:[#allocation2 + $0x270] sm:$0xff] }
  0x2d   :  { %298 = vmatpush.msrb.mxu0 %v259_v0  ;;  %338 = vmatpush.msrb.mxu2 %v260_v2  ;;  %v275_v36 = vld [vmem:[#allocation2 + $0x370] sm:$0xff]  ;;  %v244_v37 = vld [vmem:[#allocation2 + $0x278] sm:$0xff]  ;;  %v241_v39 = vld [vmem:[#allocation2 + $0x260] sm:$0xff] }
  0x2e   :  { %318 = vmatpush.msrb.mxu1 %v291_v1  ;;  %358 = vmatpush.msrb.mxu3 %v292_v3  ;;  %v1495_v33 = vld.sshfl [vmem:[#allocation1] sm:$0xff pattern:$0x73625140]  ;;  %v1497_v34 = vld.sshfl [vmem:[#allocation1 + $0x8] sm:$0xff pattern:$0x73625140] }
  0x2f   :  { %299 = vmatpush.msrb.mxu0 %v257_v4  ;;  %339 = vmatpush.msrb.mxu2 %v258_v6  ;;  %293 = vst [vmem:[#allocation1] ss:$4 sm:$0xff] %v1492_v16  ;;  %v276_v38 = vld [vmem:[#allocation2 + $0x378] sm:$0xff]  ;;  %v273_v40 = vld [vmem:[#allocation2 + $0x360] sm:$0xff]  ;;  %v242_v41 = vld [vmem:[#allocation2 + $0x268] sm:$0xff] }
  0x30   :  { %319 = vmatpush.msrb.mxu1 %v289_v5  ;;  %359 = vmatpush.msrb.mxu3 %v290_v7  ;;  %v274_v42 = vld [vmem:[#allocation2 + $0x368] sm:$0xff]  ;;  %v239_v43 = vld [vmem:[#allocation2 + $0x250] sm:$0xff]  ;;  %v240_v45 = vld [vmem:[#allocation2 + $0x258] sm:$0xff] }
  0x31   :  { %300 = vmatpush.msrb.mxu0 %v255_v8  ;;  %340 = vmatpush.msrb.mxu2 %v256_v10  ;;  %v271_v44 = vld [vmem:[#allocation2 + $0x350] sm:$0xff]  ;;  %v272_v46 = vld [vmem:[#allocation2 + $0x358] sm:$0xff]  ;;  %v237_v47 = vld [vmem:[#allocation2 + $0x240] sm:$0xff] }
  0x32   :  { %320 = vmatpush.msrb.mxu1 %v287_v9  ;;  %360 = vmatpush.msrb.mxu3 %v288_v11  ;;  %v269_v48 = vld [vmem:[#allocation2 + $0x340] sm:$0xff]  ;;  %v238_v49 = vld [vmem:[#allocation2 + $0x248] sm:$0xff]  ;;  %v235_v53 = vld [vmem:[#allocation2 + $0x230] sm:$0xff] }
  0x33   :  { %301 = vmatpush.msrb.mxu0 %v253_v12  ;;  %341 = vmatpush.msrb.mxu2 %v254_v14  ;;  %v270_v50 = vld [vmem:[#allocation2 + $0x348] sm:$0xff]  ;;  %v267_v54 = vld [vmem:[#allocation2 + $0x330] sm:$0xff]  ;;  %v236_v55 = vld [vmem:[#allocation2 + $0x238] sm:$0xff] }
  0x34   :  { %321 = vmatpush.msrb.mxu1 %v285_v13  ;;  %361 = vmatpush.msrb.mxu3 %v286_v15  ;;  %v268_v56 = vld [vmem:[#allocation2 + $0x338] sm:$0xff]  ;;  %v233_v57 = vld [vmem:[#allocation2 + $0x220] sm:$0xff]  ;;  %v234_v59 = vld [vmem:[#allocation2 + $0x228] sm:$0xff] }
  0x35   :  { %302 = vmatpush.msrb.mxu0 %v251_v17  ;;  %342 = vmatpush.msrb.mxu2 %v252_v19  ;;  %v265_v58 = vld [vmem:[#allocation2 + $0x320] sm:$0xff]  ;;  %v266_v60 = vld [vmem:[#allocation2 + $0x328] sm:$0xff]  ;;  %v231_v61 = vld [vmem:[#allocation2 + $0x210] sm:$0xff] }
  0x36   :  { %322 = vmatpush.msrb.mxu1 %v283_v18  ;;  %362 = vmatpush.msrb.mxu3 %v284_v20  ;;  %v1500_v51 = vld.sshfl [vmem:[#allocation1] sm:$0xff pattern:$0x73625140]  ;;  %v1502_v52 = vld.sshfl [vmem:[#allocation1 + $0x8] sm:$0xff pattern:$0x73625140] }
  0x37   :  { %303 = vmatpush.msrb.mxu0 %v249_v21  ;;  %343 = vmatpush.msrb.mxu2 %v250_v23  ;;  %445 = vst [vmem:[#allocation1] ss:$4 sm:$0xff] %v1492_v16  ;;  %v263_v62 = vld [vmem:[#allocation2 + $0x310] sm:$0xff]  ;;  %v232_v63 = vld [vmem:[#allocation2 + $0x218] sm:$0xff]  ;;  %v229_v1 = vld [vmem:[#allocation2 + $0x200] sm:$0xff] }
  0x38   :  { %323 = vmatpush.msrb.mxu1 %v281_v22  ;;  %363 = vmatpush.msrb.mxu3 %v282_v24  ;;  %v264_v0 = vld [vmem:[#allocation2 + $0x318] sm:$0xff]  ;;  %v261_v2 = vld [vmem:[#allocation2 + $0x300] sm:$0xff]  ;;  %v230_v3 = vld [vmem:[#allocation2 + $0x208] sm:$0xff] }
  0x39   :  { %304 = vmatpush.msrb.mxu0 %v247_v25  ;;  %344 = vmatpush.msrb.mxu2 %v248_v27  ;;  %v262_v4 = vld [vmem:[#allocation2 + $0x308] sm:$0xff]  ;;  %v411_v5 = vld [vmem:[#allocation2 + $0x4f0] sm:$0xff]  ;;  %v412_v7 = vld [vmem:[#allocation2 + $0x4f8] sm:$0xff] }
  0x3a   :  { %324 = vmatpush.msrb.mxu1 %v279_v26  ;;  %364 = vmatpush.msrb.mxu3 %v280_v28  ;;  %v443_v6 = vld [vmem:[#allocation2 + $0x5f0] sm:$0xff]  ;;  %v444_v8 = vld [vmem:[#allocation2 + $0x5f8] sm:$0xff]  ;;  %v409_v9 = vld [vmem:[#allocation2 + $0x4e0] sm:$0xff] }
  0x3b   :  { %305 = vmatpush.msrb.mxu0 %v245_v29  ;;  %345 = vmatpush.msrb.mxu2 %v246_v31  ;;  %v441_v10 = vld [vmem:[#allocation2 + $0x5e0] sm:$0xff]  ;;  %v410_v11 = vld [vmem:[#allocation2 + $0x4e8] sm:$0xff]  ;;  %v407_v15 = vld [vmem:[#allocation2 + $0x4d0] sm:$0xff] }
  0x3c   :  { %325 = vmatpush.msrb.mxu1 %v277_v30  ;;  %365 = vmatpush.msrb.mxu3 %v278_v32  ;;  %v442_v12 = vld [vmem:[#allocation2 + $0x5e8] sm:$0xff]  ;;  %v439_v17 = vld [vmem:[#allocation2 + $0x5d0] sm:$0xff]  ;;  %v408_v18 = vld [vmem:[#allocation2 + $0x4d8] sm:$0xff] }
  0x3d   :  { %306 = vmatpush.msrb.mxu0 %v243_v35  ;;  %346 = vmatpush.msrb.mxu2 %v244_v37  ;;  %v440_v19 = vld [vmem:[#allocation2 + $0x5d8] sm:$0xff]  ;;  %v405_v20 = vld [vmem:[#allocation2 + $0x4c0] sm:$0xff]  ;;  %v406_v22 = vld [vmem:[#allocation2 + $0x4c8] sm:$0xff] }
  0x3e   :  { %326 = vmatpush.msrb.mxu1 %v275_v36  ;;  %366 = vmatpush.msrb.mxu3 %v276_v38  ;;  %v1511_v13 = vld.sshfl [vmem:[#allocation1] sm:$0xff pattern:$0x73625140]  ;;  %v1513_v14 = vld.sshfl [vmem:[#allocation1 + $0x8] sm:$0xff pattern:$0x73625140] }
  0x3f   :  { %307 = vmatpush.msrb.mxu0 %v241_v39  ;;  %347 = vmatpush.msrb.mxu2 %v242_v41  ;;  %597 = vst [vmem:[#allocation1] ss:$4 sm:$0xff] %v1492_v16  ;;  %v437_v21 = vld [vmem:[#allocation2 + $0x5c0] sm:$0xff]  ;;  %v438_v23 = vld [vmem:[#allocation2 + $0x5c8] sm:$0xff]  ;;  %v403_v24 = vld [vmem:[#allocation2 + $0x4b0] sm:$0xff] }
  0x40   :  { %327 = vmatpush.msrb.mxu1 %v273_v40  ;;  %367 = vmatpush.msrb.mxu3 %v274_v42  ;;  %v435_v16 = vld [vmem:[#allocation2 + $0x5b0] sm:$0xff]  ;;  %v404_v25 = vld [vmem:[#allocation2 + $0x4b8] sm:$0xff]  ;;  %v401_v27 = vld [vmem:[#allocation2 + $0x4a0] sm:$0xff] }
  0x41   :  { %308 = vmatpush.msrb.mxu0 %v239_v43  ;;  %348 = vmatpush.msrb.mxu2 %v240_v45  ;;  %v436_v26 = vld [vmem:[#allocation2 + $0x5b8] sm:$0xff]  ;;  %v433_v28 = vld [vmem:[#allocation2 + $0x5a0] sm:$0xff]  ;;  %v402_v29 = vld [vmem:[#allocation2 + $0x4a8] sm:$0xff] }
  0x42   :  { %328 = vmatpush.msrb.mxu1 %v271_v44  ;;  %368 = vmatpush.msrb.mxu3 %v272_v46  ;;  %v434_v30 = vld [vmem:[#allocation2 + $0x5a8] sm:$0xff]  ;;  %v399_v31 = vld [vmem:[#allocation2 + $0x490] sm:$0xff]  ;;  %v397_v35 = vld [vmem:[#allocation2 + $0x480] sm:$0xff] }
  0x43   :  { %309 = vmatpush.msrb.mxu0 %v237_v47  ;;  %349 = vmatpush.msrb.mxu2 %v238_v49  ;;  %v431_v32 = vld [vmem:[#allocation2 + $0x590] sm:$0xff]  ;;  %v429_v36 = vld [vmem:[#allocation2 + $0x580] sm:$0xff]  ;;  %v398_v37 = vld [vmem:[#allocation2 + $0x488] sm:$0xff] }
  0x44   :  { %329 = vmatpush.msrb.mxu1 %v269_v48  ;;  %369 = vmatpush.msrb.mxu3 %v270_v50  ;;  %v430_v38 = vld [vmem:[#allocation2 + $0x588] sm:$0xff]  ;;  %v395_v39 = vld [vmem:[#allocation2 + $0x470] sm:$0xff]  ;;  %v396_v41 = vld [vmem:[#allocation2 + $0x478] sm:$0xff] }
  0x45   :  { %204 = vmatmul.f32.vlgmr.msra.gmra.mxu2 %v1495_v33  ;;  %224 = vmatmul.f32.vlgmr.msra.gmra.mxu3 %v1497_v34  ;;  %v427_v40 = vld [vmem:[#allocation2 + $0x570] sm:$0xff]  ;;  %v428_v42 = vld [vmem:[#allocation2 + $0x578] sm:$0xff]  ;;  %v393_v43 = vld [vmem:[#allocation2 + $0x460] sm:$0xff] }
  0x46   :  { %310 = vmatpush.msrb.mxu0 %v235_v53  ;;  %330 = vmatpush.msrb.mxu1 %v267_v54  ;;  %v425_v44 = vld [vmem:[#allocation2 + $0x560] sm:$0xff]  ;;  %v394_v45 = vld [vmem:[#allocation2 + $0x468] sm:$0xff]  ;;  %v391_v47 = vld [vmem:[#allocation2 + $0x450] sm:$0xff] }
  0x47   :  { %350 = vmatpush.msrb.mxu2 %v236_v55  ;;  %370 = vmatpush.msrb.mxu3 %v268_v56  ;;  %v426_v46 = vld [vmem:[#allocation2 + $0x568] sm:$0xff]  ;;  %v423_v48 = vld [vmem:[#allocation2 + $0x550] sm:$0xff]  ;;  %v392_v49 = vld [vmem:[#allocation2 + $0x458] sm:$0xff] }
  0x48   :  { %311 = vmatpush.msrb.mxu0 %v233_v57  ;;  %331 = vmatpush.msrb.mxu1 %v265_v58  ;;  %v424_v50 = vld [vmem:[#allocation2 + $0x558] sm:$0xff]  ;;  %v390_v53 = vld [vmem:[#allocation2 + $0x448] sm:$0xff]  ;;  %v387_v55 = vld [vmem:[#allocation2 + $0x430] sm:$0xff] }
  0x49   :  { %351 = vmatpush.msrb.mxu2 %v234_v59  ;;  %371 = vmatpush.msrb.mxu3 %v266_v60  ;;  %v422_v54 = vld [vmem:[#allocation2 + $0x548] sm:$0xff]  ;;  %v419_v56 = vld [vmem:[#allocation2 + $0x530] sm:$0xff]  ;;  %v388_v57 = vld [vmem:[#allocation2 + $0x438] sm:$0xff] }
  0x4a   :  { %312 = vmatpush.msrb.mxu0 %v231_v61  ;;  %332 = vmatpush.msrb.mxu1 %v263_v62  ;;  %v420_v58 = vld [vmem:[#allocation2 + $0x538] sm:$0xff]  ;;  %v385_v59 = vld [vmem:[#allocation2 + $0x420] sm:$0xff]  ;;  %v386_v61 = vld [vmem:[#allocation2 + $0x428] sm:$0xff] }
  0x4b   :  { %352 = vmatpush.msrb.mxu2 %v232_v63  ;;  %372 = vmatpush.msrb.mxu3 %v264_v0  ;;  %v417_v60 = vld [vmem:[#allocation2 + $0x520] sm:$0xff]  ;;  %v418_v62 = vld [vmem:[#allocation2 + $0x528] sm:$0xff]  ;;  %v383_v63 = vld [vmem:[#allocation2 + $0x410] sm:$0xff] }
  0x4c   :  { %164 = vmatmul.f32.vlgmr.msra.gmra.mxu0 %v1495_v33  ;;  %184 = vmatmul.f32.vlgmr.msra.gmra.mxu1 %v1497_v34  ;;  %v400_v33 = vld [vmem:[#allocation2 + $0x498] sm:$0xff]  ;;  %v415_v0 = vld [vmem:[#allocation2 + $0x510] sm:$0xff] }
  0x4d   :  { %313 = vmatpush.msrb.mxu0 %v229_v1  ;;  %333 = vmatpush.msrb.mxu1 %v261_v2  ;;  %v432_v34 = vld [vmem:[#allocation2 + $0x598] sm:$0xff] }
  0x4e   :  { %353 = vmatpush.msrb.mxu2 %v230_v3  ;;  %373 = vmatpush.msrb.mxu3 %v262_v4  ;;  %v384_v1 = vld [vmem:[#allocation2 + $0x418] sm:$0xff]  ;;  %v381_v3 = vld [vmem:[#allocation2 + $0x400] sm:$0xff] }
  0x4f   :  { %354 = vmatmul.f32.vlgmr.msrb.gmra.mxu2 %v1500_v51  ;;  %374 = vmatmul.f32.vlgmr.msrb.gmra.mxu3 %v1502_v52  ;;  %v416_v2 = vld [vmem:[#allocation2 + $0x518] sm:$0xff]  ;;  %v413_v4 = vld [vmem:[#allocation2 + $0x500] sm:$0xff] }
  0x50   :  { %450 = vmatpush.msra.mxu0 %v411_v5  ;;  %470 = vmatpush.msra.mxu1 %v443_v6  ;;  %v382_v5 = vld [vmem:[#allocation2 + $0x408] sm:$0xff] }
  0x51   :  { %490 = vmatpush.msra.mxu2 %v412_v7  ;;  %510 = vmatpush.msra.mxu3 %v444_v8  ;;  %v414_v6 = vld [vmem:[#allocation2 + $0x508] sm:$0xff]  ;;  %v563_v7 = vld [vmem:[#allocation2 + $0x6f0] sm:$0xff] }
  0x52   :  { %451 = vmatpush.msra.mxu0 %v409_v9  ;;  %471 = vmatpush.msra.mxu1 %v441_v10  ;;  %v595_v8 = vld [vmem:[#allocation2 + $0x7f0] sm:$0xff]  ;;  %v564_v9 = vld [vmem:[#allocation2 + $0x6f8] sm:$0xff] }
  0x53   :  { %491 = vmatpush.msra.mxu2 %v410_v11  ;;  %511 = vmatpush.msra.mxu3 %v442_v12  ;;  %v596_v10 = vld [vmem:[#allocation2 + $0x7f8] sm:$0xff]  ;;  %v561_v11 = vld [vmem:[#allocation2 + $0x6e0] sm:$0xff] }
  0x54   :  { %452 = vmatpush.msra.mxu0 %v407_v15  ;;  %472 = vmatpush.msra.mxu1 %v439_v17  ;;  %v593_v12 = vld [vmem:[#allocation2 + $0x7e0] sm:$0xff]  ;;  %v562_v15 = vld [vmem:[#allocation2 + $0x6e8] sm:$0xff] }
  0x55   :  { %492 = vmatpush.msra.mxu2 %v408_v18  ;;  %512 = vmatpush.msra.mxu3 %v440_v19  ;;  %v594_v17 = vld [vmem:[#allocation2 + $0x7e8] sm:$0xff]  ;;  %v559_v18 = vld [vmem:[#allocation2 + $0x6d0] sm:$0xff] }
  0x56   :  { %314 = vmatmul.f32.vlgmr.msrb.gmra.mxu0 %v1500_v51  ;;  %334 = vmatmul.f32.vlgmr.msrb.gmra.mxu1 %v1502_v52  ;;  %v389_v51 = vld [vmem:[#allocation2 + $0x440] sm:$0xff]  ;;  %v591_v19 = vld [vmem:[#allocation2 + $0x7d0] sm:$0xff] }
  0x57   :  { %453 = vmatpush.msra.mxu0 %v405_v20  ;;  %473 = vmatpush.msra.mxu1 %v437_v21  ;;  %v421_v52 = vld [vmem:[#allocation2 + $0x540] sm:$0xff]  ;;  %v560_v20 = vld [vmem:[#allocation2 + $0x6d8] sm:$0xff] }
  0x58   :  { %493 = vmatpush.msra.mxu2 %v406_v22  ;;  %513 = vmatpush.msra.mxu3 %v438_v23  ;;  %v592_v21 = vld [vmem:[#allocation2 + $0x7d8] sm:$0xff]  ;;  %v557_v22 = vld [vmem:[#allocation2 + $0x6c0] sm:$0xff]  ;;  %v590_v23 = vld [vmem:[#allocation2 + $0x7c8] sm:$0xff] }
  0x59   :  { %454 = vmatpush.msra.mxu0 %v403_v24  ;;  %474 = vmatpush.msra.mxu1 %v435_v16  ;;  %v555_v24 = vld [vmem:[#allocation2 + $0x6b0] sm:$0xff] }
  0x5a   :  { %494 = vmatpush.msra.mxu2 %v404_v25  ;;  %514 = vmatpush.msra.mxu3 %v436_v26  ;;  %v587_v16 = vld [vmem:[#allocation2 + $0x7b0] sm:$0xff]  ;;  %v556_v25 = vld [vmem:[#allocation2 + $0x6b8] sm:$0xff] }
  0x5b   :  { %455 = vmatpush.msra.mxu0 %v401_v27  ;;  %475 = vmatpush.msra.mxu1 %v433_v28  ;;  %v588_v26 = vld [vmem:[#allocation2 + $0x7b8] sm:$0xff]  ;;  %v553_v27 = vld [vmem:[#allocation2 + $0x6a0] sm:$0xff] }
  0x5c   :  { %495 = vmatpush.msra.mxu2 %v402_v29  ;;  %515 = vmatpush.msra.mxu3 %v434_v30  ;;  %v585_v28 = vld [vmem:[#allocation2 + $0x7a0] sm:$0xff]  ;;  %v554_v29 = vld [vmem:[#allocation2 + $0x6a8] sm:$0xff] }
  0x5d   :  { %456 = vmatpush.msra.mxu0 %v399_v31  ;;  %476 = vmatpush.msra.mxu1 %v431_v32  ;;  %v586_v30 = vld [vmem:[#allocation2 + $0x7a8] sm:$0xff]  ;;  %v551_v31 = vld [vmem:[#allocation2 + $0x690] sm:$0xff] }
  0x5e   :  { %496 = vmatpush.msra.mxu2 %v400_v33  ;;  %516 = vmatpush.msra.mxu3 %v432_v34  ;;  %v583_v32 = vld [vmem:[#allocation2 + $0x790] sm:$0xff]  ;;  %v552_v33 = vld [vmem:[#allocation2 + $0x698] sm:$0xff] }
  0x5f   :  { %457 = vmatpush.msra.mxu0 %v397_v35  ;;  %477 = vmatpush.msra.mxu1 %v429_v36  ;;  %v584_v34 = vld [vmem:[#allocation2 + $0x798] sm:$0xff]  ;;  %v549_v35 = vld [vmem:[#allocation2 + $0x680] sm:$0xff] }
  0x60   :  { %497 = vmatpush.msra.mxu2 %v398_v37  ;;  %517 = vmatpush.msra.mxu3 %v430_v38  ;;  %v581_v36 = vld [vmem:[#allocation2 + $0x780] sm:$0xff]  ;;  %v550_v37 = vld [vmem:[#allocation2 + $0x688] sm:$0xff] }
  0x61   :  { %458 = vmatpush.msra.mxu0 %v395_v39  ;;  %478 = vmatpush.msra.mxu1 %v427_v40  ;;  %v582_v38 = vld [vmem:[#allocation2 + $0x788] sm:$0xff]  ;;  %v547_v39 = vld [vmem:[#allocation2 + $0x670] sm:$0xff] }
  0x62   :  { %498 = vmatpush.msra.mxu2 %v396_v41  ;;  %518 = vmatpush.msra.mxu3 %v428_v42  ;;  %v579_v40 = vld [vmem:[#allocation2 + $0x770] sm:$0xff]  ;;  %v548_v41 = vld [vmem:[#allocation2 + $0x678] sm:$0xff] }
  0x63   :  { %459 = vmatpush.msra.mxu0 %v393_v43  ;;  %479 = vmatpush.msra.mxu1 %v425_v44  ;;  %v580_v42 = vld [vmem:[#allocation2 + $0x778] sm:$0xff]  ;;  %v545_v43 = vld [vmem:[#allocation2 + $0x660] sm:$0xff] }
  0x64   :  { %499 = vmatpush.msra.mxu2 %v394_v45  ;;  %519 = vmatpush.msra.mxu3 %v426_v46  ;;  %v577_v44 = vld [vmem:[#allocation2 + $0x760] sm:$0xff]  ;;  %v546_v45 = vld [vmem:[#allocation2 + $0x668] sm:$0xff] }
  0x65   :  { %460 = vmatpush.msra.mxu0 %v391_v47  ;;  %480 = vmatpush.msra.mxu1 %v423_v48  ;;  %v578_v46 = vld [vmem:[#allocation2 + $0x768] sm:$0xff]  ;;  %v543_v47 = vld [vmem:[#allocation2 + $0x650] sm:$0xff] }
  0x66   :  { %500 = vmatpush.msra.mxu2 %v392_v49  ;;  %520 = vmatpush.msra.mxu3 %v424_v50  ;;  %v575_v48 = vld [vmem:[#allocation2 + $0x750] sm:$0xff]  ;;  %v544_v49 = vld [vmem:[#allocation2 + $0x658] sm:$0xff] }
  0x67   :  { %461 = vmatpush.msra.mxu0 %v389_v51  ;;  %481 = vmatpush.msra.mxu1 %v421_v52  ;;  %v576_v50 = vld [vmem:[#allocation2 + $0x758] sm:$0xff]  ;;  %v541_v51 = vld [vmem:[#allocation2 + $0x640] sm:$0xff] }
  0x68   :  { %501 = vmatpush.msra.mxu2 %v390_v53  ;;  %521 = vmatpush.msra.mxu3 %v422_v54  ;;  %v573_v52 = vld [vmem:[#allocation2 + $0x740] sm:$0xff]  ;;  %v542_v53 = vld [vmem:[#allocation2 + $0x648] sm:$0xff] }
  0x69   :  { %462 = vmatpush.msra.mxu0 %v387_v55  ;;  %482 = vmatpush.msra.mxu1 %v419_v56  ;;  %v574_v54 = vld [vmem:[#allocation2 + $0x748] sm:$0xff]  ;;  %v539_v55 = vld [vmem:[#allocation2 + $0x630] sm:$0xff] }
  0x6a   :  { %502 = vmatpush.msra.mxu2 %v388_v57  ;;  %522 = vmatpush.msra.mxu3 %v420_v58  ;;  %v571_v56 = vld [vmem:[#allocation2 + $0x730] sm:$0xff]  ;;  %v540_v57 = vld [vmem:[#allocation2 + $0x638] sm:$0xff] }
  0x6b   :  { %463 = vmatpush.msra.mxu0 %v385_v59  ;;  %483 = vmatpush.msra.mxu1 %v417_v60  ;;  %v572_v58 = vld [vmem:[#allocation2 + $0x738] sm:$0xff]  ;;  %v537_v59 = vld [vmem:[#allocation2 + $0x620] sm:$0xff] }
  0x6c   :  { %503 = vmatpush.msra.mxu2 %v386_v61  ;;  %523 = vmatpush.msra.mxu3 %v418_v62  ;;  %v569_v60 = vld [vmem:[#allocation2 + $0x720] sm:$0xff]  ;;  %v538_v61 = vld [vmem:[#allocation2 + $0x628] sm:$0xff] }
  0x6d   :  { %464 = vmatpush.msra.mxu0 %v383_v63  ;;  %484 = vmatpush.msra.mxu1 %v415_v0  ;;  %v570_v62 = vld [vmem:[#allocation2 + $0x728] sm:$0xff]  ;;  %v535_v63 = vld [vmem:[#allocation2 + $0x610] sm:$0xff] }
  0x6e   :  { %504 = vmatpush.msra.mxu2 %v384_v1  ;;  %524 = vmatpush.msra.mxu3 %v416_v2  ;;  %v567_v0 = vld [vmem:[#allocation2 + $0x710] sm:$0xff]  ;;  %v536_v1 = vld [vmem:[#allocation2 + $0x618] sm:$0xff] }
  0x6f   :  { %465 = vmatpush.msra.mxu0 %v381_v3  ;;  %485 = vmatpush.msra.mxu1 %v413_v4  ;;  %v568_v2 = vld [vmem:[#allocation2 + $0x718] sm:$0xff]  ;;  %v533_v3 = vld [vmem:[#allocation2 + $0x600] sm:$0xff] }
  0x70   :  { %505 = vmatpush.msra.mxu2 %v382_v5  ;;  %525 = vmatpush.msra.mxu3 %v414_v6  ;;  %v565_v4 = vld [vmem:[#allocation2 + $0x700] sm:$0xff]  ;;  %v534_v5 = vld [vmem:[#allocation2 + $0x608] sm:$0xff] }
  0x71   :  { %466 = vmatmul.f32.vlgmr.msra.gmra.mxu0 %v1511_v13  ;;  %486 = vmatmul.f32.vlgmr.msra.gmra.mxu1 %v1513_v14  ;;  %v566_v6 = vld [vmem:[#allocation2 + $0x708] sm:$0xff] }
  0x72   :  { %506 = vmatmul.f32.vlgmr.msra.gmra.mxu2 %v1511_v13  ;;  %526 = vmatmul.f32.vlgmr.msra.gmra.mxu3 %v1513_v14  ;;  %v589_v13 = vld [vmem:[#allocation2 + $0x7c0] sm:$0xff]  ;;  %v558_v14 = vld [vmem:[#allocation2 + $0x6c8] sm:$0xff] }
  0x73   :  { %602 = vmatpush.msrb.mxu0 %v563_v7  ;;  %622 = vmatpush.msrb.mxu1 %v595_v8  ;;  %v598_v7 = vld.sshfl [vmem:[#allocation1] sm:$0xff pattern:$0x73625140]  ;;  %v599_v8 = vld.sshfl [vmem:[#allocation1 + $0x8] sm:$0xff pattern:$0x73625140] }
  0x74   :  { %642 = vmatpush.msrb.mxu2 %v564_v9  ;;  %662 = vmatpush.msrb.mxu3 %v596_v10  ;;  %v709_v9 = vld [vmem:[#allocation5 + $0x78] sm:$0xff] }
  0x75   :  { %603 = vmatpush.msrb.mxu0 %v561_v11  ;;  %623 = vmatpush.msrb.mxu1 %v593_v12  ;;  %v782_v10 = vld [vmem:[#allocation5 + $0x178] sm:$0xff]  ;;  %v708_v11 = vld [vmem:[#allocation5 + $0x70] sm:$0xff] }
  0x76   :  { %643 = vmatpush.msrb.mxu2 %v562_v15  ;;  %663 = vmatpush.msrb.mxu3 %v594_v17  ;;  %v781_v12 = vld [vmem:[#allocation5 + $0x170] sm:$0xff]  ;;  %v707_v15 = vld [vmem:[#allocation5 + $0x68] sm:$0xff] }
  0x77   :  { %604 = vmatpush.msrb.mxu0 %v559_v18  ;;  %624 = vmatpush.msrb.mxu1 %v591_v19  ;;  %v780_v17 = vld [vmem:[#allocation5 + $0x168] sm:$0xff]  ;;  %v725_v18 = vld [vmem:[#allocation5 + $0xf8] sm:$0xff] }
  0x78   :  { %644 = vmatpush.msrb.mxu2 %v560_v20  ;;  %664 = vmatpush.msrb.mxu3 %v592_v21  ;;  %v798_v19 = vld [vmem:[#allocation5 + $0x1f8] sm:$0xff]  ;;  %v724_v20 = vld [vmem:[#allocation5 + $0xf0] sm:$0xff]  ;;  %v706_v21 = vld [vmem:[#allocation5 + $0x60] sm:$0xff] }
  0x79   :  { %605 = vmatpush.msrb.mxu0 %v557_v22  ;;  %625 = vmatpush.msrb.mxu1 %v589_v13  ;;  %v779_v22 = vld [vmem:[#allocation5 + $0x160] sm:$0xff]  ;;  %v797_v13 = vld [vmem:[#allocation5 + $0x1f0] sm:$0xff] }
  0x7a   :  { %645 = vmatpush.msrb.mxu2 %v558_v14  ;;  %665 = vmatpush.msrb.mxu3 %v590_v23  ;;  %v723_v14 = vld [vmem:[#allocation5 + $0xe8] sm:$0xff] }
  0x7b   :  { %606 = vmatpush.msrb.mxu0 %v555_v24  ;;  %626 = vmatpush.msrb.mxu1 %v587_v16  ;;  %v796_v23 = vld [vmem:[#allocation5 + $0x1e8] sm:$0xff]  ;;  %v705_v24 = vld [vmem:[#allocation5 + $0x58] sm:$0xff] }
  0x7c   :  { %646 = vmatpush.msrb.mxu2 %v556_v25  ;;  %666 = vmatpush.msrb.mxu3 %v588_v26  ;;  %v778_v16 = vld [vmem:[#allocation5 + $0x158] sm:$0xff]  ;;  %v722_v25 = vld [vmem:[#allocation5 + $0xe0] sm:$0xff] }
  0x7d   :  { %607 = vmatpush.msrb.mxu0 %v553_v27  ;;  %627 = vmatpush.msrb.mxu1 %v585_v28  ;;  %v795_v26 = vld [vmem:[#allocation5 + $0x1e0] sm:$0xff]  ;;  %v704_v27 = vld [vmem:[#allocation5 + $0x50] sm:$0xff] }
  0x7e   :  { %647 = vmatpush.msrb.mxu2 %v554_v29  ;;  %667 = vmatpush.msrb.mxu3 %v586_v30  ;;  %v777_v28 = vld [vmem:[#allocation5 + $0x150] sm:$0xff]  ;;  %v703_v29 = vld [vmem:[#allocation5 + $0x48] sm:$0xff] }
  0x7f   :  { %608 = vmatpush.msrb.mxu0 %v551_v31  ;;  %628 = vmatpush.msrb.mxu1 %v583_v32  ;;  %v776_v30 = vld [vmem:[#allocation5 + $0x148] sm:$0xff]  ;;  %v702_v31 = vld [vmem:[#allocation5 + $0x40] sm:$0xff]  ;;  %v721_v32 = vld [vmem:[#allocation5 + $0xd8] sm:$0xff] }
  0x80   :  { %648 = vmatpush.msrb.mxu2 %v552_v33  ;;  %668 = vmatpush.msrb.mxu3 %v584_v34  ;;  %v775_v33 = vld [vmem:[#allocation5 + $0x140] sm:$0xff]  ;;  %v794_v34 = vld [vmem:[#allocation5 + $0x1d8] sm:$0xff] }
  0x81   :  { %609 = vmatpush.msrb.mxu0 %v549_v35  ;;  %629 = vmatpush.msrb.mxu1 %v581_v36  ;;  %v701_v35 = vld [vmem:[#allocation5 + $0x38] sm:$0xff]  ;;  %v720_v36 = vld [vmem:[#allocation5 + $0xd0] sm:$0xff] }
  0x82   :  { %649 = vmatpush.msrb.mxu2 %v550_v37  ;;  %669 = vmatpush.msrb.mxu3 %v582_v38  ;;  %v774_v37 = vld [vmem:[#allocation5 + $0x138] sm:$0xff]  ;;  %v793_v38 = vld [vmem:[#allocation5 + $0x1d0] sm:$0xff] }
  0x83   :  { %610 = vmatpush.msrb.mxu0 %v547_v39  ;;  %630 = vmatpush.msrb.mxu1 %v579_v40  ;;  %v700_v39 = vld [vmem:[#allocation5 + $0x30] sm:$0xff]  ;;  %v719_v40 = vld [vmem:[#allocation5 + $0xc8] sm:$0xff] }
  0x84   :  { %650 = vmatpush.msrb.mxu2 %v548_v41  ;;  %670 = vmatpush.msrb.mxu3 %v580_v42  ;;  %v773_v41 = vld [vmem:[#allocation5 + $0x130] sm:$0xff]  ;;  %v792_v42 = vld [vmem:[#allocation5 + $0x1c8] sm:$0xff] }
  0x85   :  { %611 = vmatpush.msrb.mxu0 %v545_v43  ;;  %631 = vmatpush.msrb.mxu1 %v577_v44  ;;  %v699_v43 = vld [vmem:[#allocation5 + $0x28] sm:$0xff]  ;;  %v718_v44 = vld [vmem:[#allocation5 + $0xc0] sm:$0xff] }
  0x86   :  { %651 = vmatpush.msrb.mxu2 %v546_v45  ;;  %671 = vmatpush.msrb.mxu3 %v578_v46  ;;  %v772_v45 = vld [vmem:[#allocation5 + $0x128] sm:$0xff]  ;;  %v791_v46 = vld [vmem:[#allocation5 + $0x1c0] sm:$0xff] }
  0x87   :  { %612 = vmatpush.msrb.mxu0 %v543_v47  ;;  %632 = vmatpush.msrb.mxu1 %v575_v48  ;;  %v698_v47 = vld [vmem:[#allocation5 + $0x20] sm:$0xff]  ;;  %v717_v48 = vld [vmem:[#allocation5 + $0xb8] sm:$0xff] }
  0x88   :  { %652 = vmatpush.msrb.mxu2 %v544_v49  ;;  %672 = vmatpush.msrb.mxu3 %v576_v50  ;;  %v771_v49 = vld [vmem:[#allocation5 + $0x120] sm:$0xff]  ;;  %v790_v50 = vld [vmem:[#allocation5 + $0x1b8] sm:$0xff] }
  0x89   :  { %613 = vmatpush.msrb.mxu0 %v541_v51  ;;  %633 = vmatpush.msrb.mxu1 %v573_v52  ;;  %v697_v51 = vld [vmem:[#allocation5 + $0x18] sm:$0xff]  ;;  %v716_v52 = vld [vmem:[#allocation5 + $0xb0] sm:$0xff] }
  0x8a   :  { %653 = vmatpush.msrb.mxu2 %v542_v53  ;;  %673 = vmatpush.msrb.mxu3 %v574_v54  ;;  %v770_v53 = vld [vmem:[#allocation5 + $0x118] sm:$0xff]  ;;  %v789_v54 = vld [vmem:[#allocation5 + $0x1b0] sm:$0xff] }
  0x8b   :  { %614 = vmatpush.msrb.mxu0 %v539_v55  ;;  %634 = vmatpush.msrb.mxu1 %v571_v56  ;;  %v696_v55 = vld [vmem:[#allocation5 + $0x10] sm:$0xff]  ;;  %v715_v56 = vld [vmem:[#allocation5 + $0xa8] sm:$0xff] }
  0x8c   :  { %654 = vmatpush.msrb.mxu2 %v540_v57  ;;  %674 = vmatpush.msrb.mxu3 %v572_v58  ;;  %v769_v57 = vld [vmem:[#allocation5 + $0x110] sm:$0xff]  ;;  %v788_v58 = vld [vmem:[#allocation5 + $0x1a8] sm:$0xff] }
  0x8d   :  { %615 = vmatpush.msrb.mxu0 %v537_v59  ;;  %635 = vmatpush.msrb.mxu1 %v569_v60  ;;  %v695_v59 = vld [vmem:[#allocation5 + $0x8] sm:$0xff]  ;;  %v714_v60 = vld [vmem:[#allocation5 + $0xa0] sm:$0xff] }
  0x8e   :  { %655 = vmatpush.msrb.mxu2 %v538_v61  ;;  %675 = vmatpush.msrb.mxu3 %v570_v62  ;;  %v768_v61 = vld [vmem:[#allocation5 + $0x108] sm:$0xff]  ;;  %v787_v62 = vld [vmem:[#allocation5 + $0x1a0] sm:$0xff] }
  0x8f   :  { %616 = vmatpush.msrb.mxu0 %v535_v63  ;;  %636 = vmatpush.msrb.mxu1 %v567_v0  ;;  %v694_v63 = vld [vmem:[#allocation5] sm:$0xff]  ;;  %v713_v0 = vld [vmem:[#allocation5 + $0x98] sm:$0xff] }
  0x90   :  { %656 = vmatpush.msrb.mxu2 %v536_v1  ;;  %676 = vmatpush.msrb.mxu3 %v568_v2  ;;  %v767_v1 = vld [vmem:[#allocation5 + $0x100] sm:$0xff]  ;;  %v786_v2 = vld [vmem:[#allocation5 + $0x198] sm:$0xff] }
  0x91   :  { %617 = vmatpush.msrb.mxu0 %v533_v3  ;;  %637 = vmatpush.msrb.mxu1 %v565_v4  ;;  %v856_v3 = vld [vmem:[#allocation5 + $0x278] sm:$0xff] }
  0x92   :  { %657 = vmatpush.msrb.mxu2 %v534_v5  ;;  %677 = vmatpush.msrb.mxu3 %v566_v6  ;;  %v930_v4 = vld [vmem:[#allocation5 + $0x378] sm:$0xff]  ;;  %v712_v5 = vld [vmem:[#allocation5 + $0x90] sm:$0xff] }
  0x93   :  { %618 = vmatmul.f32.vlgmr.msrb.gmra.mxu0 %v598_v7  ;;  %638 = vmatmul.f32.vlgmr.msrb.gmra.mxu1 %v599_v8  ;;  %v785_v6 = vld [vmem:[#allocation5 + $0x190] sm:$0xff] }
  0x94   :  { %658 = vmatmul.f32.vlgmr.msrb.gmra.mxu2 %v598_v7  ;;  %678 = vmatmul.f32.vlgmr.msrb.gmra.mxu3 %v599_v8  ;;  %v855_v7 = vld [vmem:[#allocation5 + $0x270] sm:$0xff] }
  0x95   :  { %726 = vmatpush.msra.mxu0 %v709_v9  ;;  %799 = vmatpush.msra.mxu2 %v782_v10  ;;  %v929_v8 = vld [vmem:[#allocation5 + $0x370] sm:$0xff]  ;;  %v711_v9 = vld [vmem:[#allocation5 + $0x88] sm:$0xff] }
  0x96   :  { %746 = vmatpush.msra.mxu1 %v725_v18  ;;  %819 = vmatpush.msra.mxu3 %v798_v19  ;;  %v784_v10 = vld [vmem:[#allocation5 + $0x188] sm:$0xff]  ;;  %v853_v18 = vld [vmem:[#allocation5 + $0x260] sm:$0xff]  ;;  %v872_v19 = vld [vmem:[#allocation5 + $0x2f8] sm:$0xff] }
  0x97   :  { %727 = vmatpush.msra.mxu0 %v708_v11  ;;  %800 = vmatpush.msra.mxu2 %v781_v12  ;;  %v854_v11 = vld [vmem:[#allocation5 + $0x268] sm:$0xff] }
  0x98   :  { %747 = vmatpush.msra.mxu1 %v724_v20  ;;  %820 = vmatpush.msra.mxu3 %v797_v13  ;;  %v928_v12 = vld [vmem:[#allocation5 + $0x368] sm:$0xff]  ;;  %v927_v20 = vld [vmem:[#allocation5 + $0x360] sm:$0xff]  ;;  %v871_v13 = vld [vmem:[#allocation5 + $0x2f0] sm:$0xff] }
  0x99   :  { %728 = vmatpush.msra.mxu0 %v707_v15  ;;  %801 = vmatpush.msra.mxu2 %v780_v17  ;;  %v710_v15 = vld [vmem:[#allocation5 + $0x80] sm:$0xff] }
  0x9a   :  { %748 = vmatpush.msra.mxu1 %v723_v14  ;;  %821 = vmatpush.msra.mxu3 %v796_v23  ;;  %v783_v17 = vld [vmem:[#allocation5 + $0x180] sm:$0xff]  ;;  %v926_v14 = vld [vmem:[#allocation5 + $0x358] sm:$0xff]  ;;  %v945_v23 = vld [vmem:[#allocation5 + $0x3f0] sm:$0xff] }
  0x9b   :  { %729 = vmatpush.msra.mxu0 %v706_v21  ;;  %802 = vmatpush.msra.mxu2 %v779_v22  ;;  %v946_v21 = vld [vmem:[#allocation5 + $0x3f8] sm:$0xff] }
  0x9c   :  { %749 = vmatpush.msra.mxu1 %v722_v25  ;;  %822 = vmatpush.msra.mxu3 %v795_v26  ;;  %v852_v22 = vld [vmem:[#allocation5 + $0x258] sm:$0xff]  ;;  %v925_v25 = vld [vmem:[#allocation5 + $0x350] sm:$0xff]  ;;  %v944_v26 = vld [vmem:[#allocation5 + $0x3e8] sm:$0xff] }
  0x9d   :  { %730 = vmatpush.msra.mxu0 %v705_v24  ;;  %803 = vmatpush.msra.mxu2 %v778_v16  ;;  %v851_v24 = vld [vmem:[#allocation5 + $0x250] sm:$0xff]  ;;  %v870_v16 = vld [vmem:[#allocation5 + $0x2e8] sm:$0xff] }
  0x9e   :  { %750 = vmatpush.msra.mxu1 %v721_v32  ;;  %823 = vmatpush.msra.mxu3 %v794_v34  ;;  %v868_v32 = vld [vmem:[#allocation5 + $0x2d8] sm:$0xff] }
  0x9f   :  { %731 = vmatpush.msra.mxu0 %v704_v27  ;;  %804 = vmatpush.msra.mxu2 %v777_v28  ;;  %v850_v27 = vld [vmem:[#allocation5 + $0x248] sm:$0xff]  ;;  %v869_v28 = vld [vmem:[#allocation5 + $0x2e0] sm:$0xff]  ;;  %v942_v34 = vld [vmem:[#allocation5 + $0x3d8] sm:$0xff] }
  0xa0   :  { %751 = vmatpush.msra.mxu1 %v720_v36  ;;  %824 = vmatpush.msra.mxu3 %v793_v38  ;;  %v867_v36 = vld [vmem:[#allocation5 + $0x2d0] sm:$0xff] }
  0xa1   :  { %732 = vmatpush.msra.mxu0 %v703_v29  ;;  %805 = vmatpush.msra.mxu2 %v776_v30  ;;  %v924_v29 = vld [vmem:[#allocation5 + $0x348] sm:$0xff]  ;;  %v943_v30 = vld [vmem:[#allocation5 + $0x3e0] sm:$0xff]  ;;  %v941_v38 = vld [vmem:[#allocation5 + $0x3d0] sm:$0xff] }
  0xa2   :  { %752 = vmatpush.msra.mxu1 %v719_v40  ;;  %825 = vmatpush.msra.mxu3 %v792_v42  ;;  %v866_v40 = vld [vmem:[#allocation5 + $0x2c8] sm:$0xff] }
  0xa3   :  { %733 = vmatpush.msra.mxu0 %v702_v31  ;;  %806 = vmatpush.msra.mxu2 %v775_v33  ;;  %v849_v31 = vld [vmem:[#allocation5 + $0x240] sm:$0xff]  ;;  %v940_v42 = vld [vmem:[#allocation5 + $0x3c8] sm:$0xff] }
  0xa4   :  { %753 = vmatpush.msra.mxu1 %v718_v44  ;;  %826 = vmatpush.msra.mxu3 %v791_v46  ;;  %v923_v33 = vld [vmem:[#allocation5 + $0x340] sm:$0xff] }
  0xa5   :  { %734 = vmatpush.msra.mxu0 %v701_v35  ;;  %807 = vmatpush.msra.mxu2 %v774_v37  ;;  %v848_v35 = vld [vmem:[#allocation5 + $0x238] sm:$0xff]  ;;  %v865_v46 = vld [vmem:[#allocation5 + $0x2c0] sm:$0xff] }
  0xa6   :  { %754 = vmatpush.msra.mxu1 %v717_v48  ;;  %827 = vmatpush.msra.mxu3 %v790_v50  ;;  %v922_v37 = vld [vmem:[#allocation5 + $0x338] sm:$0xff]  ;;  %v939_v48 = vld [vmem:[#allocation5 + $0x3c0] sm:$0xff] }
  0xa7   :  { %735 = vmatpush.msra.mxu0 %v700_v39  ;;  %808 = vmatpush.msra.mxu2 %v773_v41  ;;  %v847_v39 = vld [vmem:[#allocation5 + $0x230] sm:$0xff]  ;;  %v864_v50 = vld [vmem:[#allocation5 + $0x2b8] sm:$0xff] }
  0xa8   :  { %755 = vmatpush.msra.mxu1 %v716_v52  ;;  %828 = vmatpush.msra.mxu3 %v789_v54  ;;  %v921_v41 = vld [vmem:[#allocation5 + $0x330] sm:$0xff]  ;;  %v938_v52 = vld [vmem:[#allocation5 + $0x3b8] sm:$0xff] }
  0xa9   :  { %736 = vmatpush.msra.mxu0 %v699_v43  ;;  %809 = vmatpush.msra.mxu2 %v772_v45  ;;  %v846_v45 = vld [vmem:[#allocation5 + $0x228] sm:$0xff]  ;;  %v863_v54 = vld [vmem:[#allocation5 + $0x2b0] sm:$0xff] }
  0xaa   :  { %756 = vmatpush.msra.mxu1 %v715_v56  ;;  %829 = vmatpush.msra.mxu3 %v788_v58  ;;  %v937_v56 = vld [vmem:[#allocation5 + $0x3b0] sm:$0xff]  ;;  %v862_v58 = vld [vmem:[#allocation5 + $0x2a8] sm:$0xff] }
  0xab   :  { %737 = vmatpush.msra.mxu0 %v698_v47  ;;  %810 = vmatpush.msra.mxu2 %v771_v49  ;;  %v920_v47 = vld [vmem:[#allocation5 + $0x328] sm:$0xff]  ;;  %v845_v49 = vld [vmem:[#allocation5 + $0x220] sm:$0xff] }
  0xac   :  { %757 = vmatpush.msra.mxu1 %v714_v60  ;;  %830 = vmatpush.msra.mxu3 %v787_v62  ;;  %v936_v62 = vld [vmem:[#allocation5 + $0x3a8] sm:$0xff] }
  0xad   :  { %738 = vmatpush.msra.mxu0 %v697_v51  ;;  %811 = vmatpush.msra.mxu2 %v770_v53  ;;  %v919_v51 = vld [vmem:[#allocation5 + $0x320] sm:$0xff]  ;;  %v844_v53 = vld [vmem:[#allocation5 + $0x218] sm:$0xff] }
  0xae   :  { %758 = vmatpush.msra.mxu1 %v713_v0  ;;  %831 = vmatpush.msra.mxu3 %v786_v2  ;;  %v861_v0 = vld [vmem:[#allocation5 + $0x2a0] sm:$0xff] }
  0xaf   :  { %739 = vmatpush.msra.mxu0 %v696_v55  ;;  %812 = vmatpush.msra.mxu2 %v769_v57  ;;  %v918_v55 = vld [vmem:[#allocation5 + $0x318] sm:$0xff]  ;;  %v843_v57 = vld [vmem:[#allocation5 + $0x210] sm:$0xff]  ;;  %v935_v2 = vld [vmem:[#allocation5 + $0x3a0] sm:$0xff] }
  0xb0   :  { %759 = vmatpush.msra.mxu1 %v712_v5  ;;  %832 = vmatpush.msra.mxu3 %v785_v6  ;;  %v841_v5 = vld [vmem:[#allocation5 + $0x200] sm:$0xff]  ;;  %v860_v6 = vld [vmem:[#allocation5 + $0x298] sm:$0xff] }
  0xb1   :  { %740 = vmatpush.msra.mxu0 %v695_v59  ;;  %813 = vmatpush.msra.mxu2 %v768_v61  ;;  %v917_v59 = vld [vmem:[#allocation5 + $0x310] sm:$0xff] }
  0xb2   :  { %760 = vmatpush.msra.mxu1 %v711_v9  ;;  %833 = vmatpush.msra.mxu3 %v784_v10  ;;  %v859_v9 = vld [vmem:[#allocation5 + $0x290] sm:$0xff] }
  0xb3   :  { %741 = vmatpush.msra.mxu0 %v694_v63  ;;  %814 = vmatpush.msra.mxu2 %v767_v1  ;;  %v842_v63 = vld [vmem:[#allocation5 + $0x208] sm:$0xff]  ;;  %v933_v10 = vld [vmem:[#allocation5 + $0x390] sm:$0xff] }
  0xb4   :  { %761 = vmatpush.msra.mxu1 %v710_v15  ;;  %834 = vmatpush.msra.mxu3 %v783_v17  ;;  %v916_v1 = vld [vmem:[#allocation5 + $0x308] sm:$0xff]  ;;  %v857_v15 = vld [vmem:[#allocation5 + $0x280] sm:$0xff] }
  0xb5   :  { %873 = vmatpush.msrb.mxu0 %v856_v3  ;;  %947 = vmatpush.msrb.mxu2 %v930_v4  ;;  %v931_v17 = vld [vmem:[#allocation5 + $0x380] sm:$0xff] }
  0xb6   :  { %893 = vmatpush.msrb.mxu1 %v872_v19  ;;  %967 = vmatpush.msrb.mxu3 %v946_v21 }
  0xb7   :  { %874 = vmatpush.msrb.mxu0 %v855_v7  ;;  %948 = vmatpush.msrb.mxu2 %v929_v8  ;;  %v915_v7 = vld [vmem:[#allocation5 + $0x300] sm:$0xff]  ;;  %v934_v8 = vld [vmem:[#allocation5 + $0x398] sm:$0xff] }
  0xb8   :  { %894 = vmatpush.msrb.mxu1 %v871_v13  ;;  %968 = vmatpush.msrb.mxu3 %v945_v23  ;;  %v684_v23 = vld [vmem:[%s1773_s2] sm:$0x3] }
  0xb9   :  { %875 = vmatpush.msrb.mxu0 %v854_v11  ;;  %949 = vmatpush.msrb.mxu2 %v928_v12  ;;  %v858_v11 = vld [vmem:[#allocation5 + $0x288] sm:$0xff] }
  0xba   :  { %895 = vmatpush.msrb.mxu1 %v870_v16  ;;  %969 = vmatpush.msrb.mxu3 %v944_v26  ;;  %v932_v12 = vld [vmem:[#allocation5 + $0x388] sm:$0xff] }
  0xbb   :  { %876 = vmatpush.msrb.mxu0 %v853_v18  ;;  %950 = vmatpush.msrb.mxu2 %v927_v20 }
  0xbc   :  { %896 = vmatpush.msrb.mxu1 %v869_v28  ;;  %970 = vmatpush.msrb.mxu3 %v943_v30  ;;  %v686_v30 = vperm.slane %v684_v23, 0 }
  0xbd   :  { %877 = vmatpush.msrb.mxu0 %v852_v22  ;;  %951 = vmatpush.msrb.mxu2 %v926_v14 }
  0xbe   :  { %897 = vmatpush.msrb.mxu1 %v868_v32  ;;  %971 = vmatpush.msrb.mxu3 %v942_v34 }
  0xbf   :  { %878 = vmatpush.msrb.mxu0 %v851_v24  ;;  %952 = vmatpush.msrb.mxu2 %v925_v25 }
  0xc0   :  { %898 = vmatpush.msrb.mxu1 %v867_v36  ;;  %972 = vmatpush.msrb.mxu3 %v941_v38 }
  0xc1   :  { %879 = vmatpush.msrb.mxu0 %v850_v27  ;;  %953 = vmatpush.msrb.mxu2 %v924_v29 }
  0xc2   :  { %899 = vmatpush.msrb.mxu1 %v866_v40  ;;  %973 = vmatpush.msrb.mxu3 %v940_v42  ;;  %v1009_v40 = vld [vmem:[%s1776_s5 + $0x78] sm:$0xff] }
  0xc3   :  { %880 = vmatpush.msrb.mxu0 %v849_v31  ;;  %954 = vmatpush.msrb.mxu2 %v923_v33 }
  0xc4   :  { %900 = vmatpush.msrb.mxu1 %v865_v46  ;;  %974 = vmatpush.msrb.mxu3 %v939_v48  ;;  %v1280_v48 = vld [vmem:[%s1776_s5 + $0xf8] sm:$0xff] }
  0xc5   :  { %881 = vmatpush.msrb.mxu0 %v848_v35  ;;  %955 = vmatpush.msrb.mxu2 %v922_v37 }
  0xc6   :  { %901 = vmatpush.msrb.mxu1 %v864_v50  ;;  %975 = vmatpush.msrb.mxu3 %v938_v52  ;;  %v1008_v50 = vld [vmem:[%s1776_s5 + $0x70] sm:$0xff] }
  0xc7   :  { %882 = vmatpush.msrb.mxu0 %v847_v39  ;;  %956 = vmatpush.msrb.mxu2 %v921_v41  ;;  %v1296_v41 = vld [vmem:[%s1776_s5 + $0x178] sm:$0xff]  ;;  %v1295_v52 = vld [vmem:[%s1776_s5 + $0x170] sm:$0xff] }
  0xc8   :  { %902 = vmatpush.msrb.mxu1 %v863_v54  ;;  %v205_v60 = vpop.f32.mrf.mxu2  ;;  %v225_v61 = vpop.f32.mrf.mxu3  ;;  %976 = vmatpush.msrb.mxu3 %v937_v56  ;;  %v1007_v54 = vld [vmem:[%s1776_s5 + $0x68] sm:$0xff] }
  0xc9   :  { %v1522_v43 = vpop.f32.mrf.mxu0  ;;  %v1524_v44 = vpop.f32.mrf.mxu1  ;;  %883 = vmatpush.msrb.mxu0 %v846_v45  ;;  %957 = vmatpush.msrb.mxu2 %v920_v47  ;;  %v226_v31 = vadd.f32 %v225_v61, %v205_v60  ;;  %v1294_v56 = vld [vmem:[%s1776_s5 + $0x168] sm:$0xff]  ;;  %v1293_v60 = vld [vmem:[%s1776_s5 + $0x160] sm:$0xff] }
  0xca   :  { %903 = vmatpush.msrb.mxu1 %v862_v58  ;;  %977 = vmatpush.msrb.mxu3 %v936_v62  ;;  %v186_v22 = vadd.f32 %v1524_v44, %v1522_v43  ;;  %v687_v44 = vperm.slane %v684_v23, 1  ;;  %v1006_v58 = vld [vmem:[%s1776_s5 + $0x60] sm:$0xff]  ;;  %v1005_v62 = vld [vmem:[%s1776_s5 + $0x58] sm:$0xff]  ;;  %v999_v23 = vld [vmem:[%s1776_s5 + $0x28] sm:$0xff] }
  0xcb   :  { %884 = vmatpush.msrb.mxu0 %v845_v49  ;;  %958 = vmatpush.msrb.mxu2 %v919_v51  ;;  %v1312_v49 = vld [vmem:[%s1776_s5 + $0x1f8] sm:$0xff]  ;;  %v1279_v51 = vld [vmem:[%s1776_s5 + $0xf0] sm:$0xff]  ;;  %v1309_v61 = vld [vmem:[%s1776_s5 + $0x1e0] sm:$0xff] }
  0xcc   :  { %904 = vmatpush.msrb.mxu1 %v861_v0  ;;  %978 = vmatpush.msrb.mxu3 %v935_v2  ;;  %v1292_v0 = vld [vmem:[%s1776_s5 + $0x158] sm:$0xff]  ;;  %v1004_v2 = vld [vmem:[%s1776_s5 + $0x50] sm:$0xff] }
  0xcd   :  { %885 = vmatpush.msrb.mxu0 %v844_v53  ;;  %959 = vmatpush.msrb.mxu2 %v918_v55  ;;  %v1311_v53 = vld [vmem:[%s1776_s5 + $0x1f0] sm:$0xff]  ;;  %v1278_v55 = vld [vmem:[%s1776_s5 + $0xe8] sm:$0xff] }
  0xce   :  { %905 = vmatpush.msrb.mxu1 %v860_v6  ;;  %979 = vmatpush.msrb.mxu3 %v934_v8  ;;  %v1003_v6 = vld [vmem:[%s1776_s5 + $0x48] sm:$0xff] }
  0xcf   :  { %886 = vmatpush.msrb.mxu0 %v843_v57  ;;  %960 = vmatpush.msrb.mxu2 %v917_v59  ;;  %v1310_v57 = vld [vmem:[%s1776_s5 + $0x1e8] sm:$0xff]  ;;  %v1277_v59 = vld [vmem:[%s1776_s5 + $0xe0] sm:$0xff] }
  0xd0   :  { %906 = vmatpush.msrb.mxu1 %v859_v9  ;;  %980 = vmatpush.msrb.mxu3 %v933_v10  ;;  %v1290_v8 = vld [vmem:[%s1776_s5 + $0x148] sm:$0xff]  ;;  %v1002_v10 = vld [vmem:[%s1776_s5 + $0x40] sm:$0xff] }
  0xd1   :  { %887 = vmatpush.msrb.mxu0 %v842_v63  ;;  %961 = vmatpush.msrb.mxu2 %v916_v1  ;;  %v1276_v63 = vld [vmem:[%s1776_s5 + $0xd8] sm:$0xff]  ;;  %v1306_v9 = vld [vmem:[%s1776_s5 + $0x1c8] sm:$0xff] }
  0xd2   :  { %907 = vmatpush.msrb.mxu1 %v858_v11  ;;  %v355_v18 = vpop.f32.mrf.mxu2  ;;  %v375_v19 = vpop.f32.mrf.mxu3  ;;  %981 = vmatpush.msrb.mxu3 %v932_v12  ;;  %v1308_v1 = vld [vmem:[%s1776_s5 + $0x1d8] sm:$0xff]  ;;  %v1273_v11 = vld [vmem:[%s1776_s5 + $0xc0] sm:$0xff] }
  0xd3   :  { %v315_v3 = vpop.f32.mrf.mxu0  ;;  %v335_v4 = vpop.f32.mrf.mxu1  ;;  %888 = vmatpush.msrb.mxu0 %v841_v5  ;;  %962 = vmatpush.msrb.mxu2 %v915_v7  ;;  %v376_v32 = vadd.f32 %v375_v19, %v355_v18  ;;  %v1307_v5 = vld [vmem:[%s1776_s5 + $0x1d0] sm:$0xff]  ;;  %v1274_v7 = vld [vmem:[%s1776_s5 + $0xc8] sm:$0xff]  ;;  %v1289_v12 = vld [vmem:[%s1776_s5 + $0x140] sm:$0xff] }
  0xd4   :  { %908 = vmatpush.msrb.mxu1 %v857_v15  ;;  %982 = vmatpush.msrb.mxu3 %v931_v17  ;;  %v336_v13 = vadd.f32 %v335_v4, %v315_v3  ;;  %v1275_v3 = vld [vmem:[%s1776_s5 + $0xd0] sm:$0xff]  ;;  %v1305_v15 = vld [vmem:[%s1776_s5 + $0x1c0] sm:$0xff]  ;;  %v1001_v17 = vld [vmem:[%s1776_s5 + $0x38] sm:$0xff] }
  0xd5   :  { %v379_v36 = vmax.f32 %v226_v31, %v376_v32  ;;  %v1291_v4 = vld [vmem:[%s1776_s5 + $0x150] sm:$0xff]  ;;  %v1272_v18 = vld [vmem:[%s1776_s5 + $0xb8] sm:$0xff] }
  0xd6   :  { %v378_v24 = vmax.f32 %v186_v22, %v336_v13  ;;  %v1288_v19 = vld [vmem:[%s1776_s5 + $0x138] sm:$0xff]  ;;  %v1271_v22 = vld [vmem:[%s1776_s5 + $0xb0] sm:$0xff] }
  0xd7   :  { %v1287_v13 = vld [vmem:[%s1776_s5 + $0x130] sm:$0xff]  ;;  %v1268_v31 = vld [vmem:[%s1776_s5 + $0x98] sm:$0xff] }
  0xd8   :  { %v1284_v32 = vld [vmem:[%s1776_s5 + $0x118] sm:$0xff] }
  0xee   :  { %v467_v20 = vpop.f32.mrf.mxu0  ;;  %v487_v21 = vpop.f32.mrf.mxu1 }
  0xef   :  { %v488_v14 = vadd.f32 %v487_v21, %v467_v20  ;;  %v1304_v20 = vld [vmem:[%s1776_s5 + $0x1b8] sm:$0xff]  ;;  %v1000_v21 = vld [vmem:[%s1776_s5 + $0x30] sm:$0xff] }
  0xf1   :  { %v530_v28 = vmax.f32 %v378_v24, %v488_v14  ;;  %v1303_v14 = vld [vmem:[%s1776_s5 + $0x1b0] sm:$0xff]  ;;  %v1270_v24 = vld [vmem:[%s1776_s5 + $0xa8] sm:$0xff] }
  0xf5   :  { %v507_v16 = vpop.f32.mrf.mxu2  ;;  %v527_v25 = vpop.f32.mrf.mxu3 }
  0xf6   :  { %v528_v34 = vadd.f32 %v527_v25, %v507_v16  ;;  %v1286_v16 = vld [vmem:[%s1776_s5 + $0x128] sm:$0xff] }
  0xf7   :  { %v1302_v25 = vld [vmem:[%s1776_s5 + $0x1a8] sm:$0xff] }
  0xf8   :  { %v531_v42 = vmax.f32 %v379_v36, %v528_v34  ;;  %v996_v34 = vld [vmem:[%s1776_s5 + $0x10] sm:$0xff] }
  0xf9   :  { %v1283_v36 = vld [vmem:[%s1776_s5 + $0x110] sm:$0xff] }
 0x110   :  { %v619_v26 = vpop.f32.mrf.mxu0  ;;  %v639_v27 = vpop.f32.mrf.mxu1 }
 0x111   :  { %v640_v29 = vadd.f32 %v639_v27, %v619_v26  ;;  %v998_v26 = vld [vmem:[%s1776_s5 + $0x20] sm:$0xff] }
 0x112   :  { %v1269_v27 = vld [vmem:[%s1776_s5 + $0xa0] sm:$0xff] }
 0x113   :  { %v682_v33 = vmax.f32 %v530_v28, %v640_v29  ;;  %v1285_v28 = vld [vmem:[%s1776_s5 + $0x120] sm:$0xff] }
 0x114   :  { %v1301_v29 = vld [vmem:[%s1776_s5 + $0x1a0] sm:$0xff] }
 0x115   :  { %v690_v35 = vadd.f32 %v686_v30, %v682_v33  ;;  %v997_v30 = vld [vmem:[%s1776_s5 + $0x18] sm:$0xff] }
 0x116   :  { %v1300_v33 = vld [vmem:[%s1776_s5 + $0x198] sm:$0xff] }
 0x117   :  { %v692_v37 = vmax.f32 %v690_v35, 0.0  ;;  %v659_v38 = vpop.f32.mrf.mxu2  ;;  %v679_v39 = vpop.f32.mrf.mxu3  ;;  %v1267_v35 = vld [vmem:[%s1776_s5 + $0x90] sm:$0xff] }
 0x118   :  { %v680_v43 = vadd.f32 %v679_v39, %v659_v38  ;;  %v995_v38 = vld [vmem:[%s1776_s5 + $0x8] sm:$0xff] }
 0x119   :  { %742 = vmatmul.f32.vlgmr.msra.gmra.mxu0 %v692_v37  ;;  %815 = vmatmul.f32.vlgmr.msra.gmra.mxu2 %v692_v37  ;;  %v1266_v39 = vld [vmem:[%s1776_s5 + $0x88] sm:$0xff] }
 0x11a   :  { %v683_v45 = vmax.f32 %v531_v42, %v680_v43  ;;  %1010 = vmatpush.msra.mxu0 %v1009_v40  ;;  %1085 = vmatpush.msra.mxu2 %v1296_v41  ;;  %v1282_v40 = vld [vmem:[%s1776_s5 + $0x108] sm:$0xff]  ;;  %v994_v42 = vld [vmem:[%s1776_s5] sm:$0xff] }
 0x11b   :  { %v1298_v41 = vld [vmem:[%s1776_s5 + $0x188] sm:$0xff]  ;;  %v1265_v43 = vld [vmem:[%s1776_s5 + $0x80] sm:$0xff] }
 0x11c   :  { %v691_v46 = vadd.f32 %v687_v44, %v683_v45  ;;  %1011 = vmatpush.msra.mxu0 %v1008_v50  ;;  %1086 = vmatpush.msra.mxu2 %v1295_v52  ;;  %v1281_v44 = vld [vmem:[%s1776_s5 + $0x100] sm:$0xff] }
 0x11d   :  { %v1297_v45 = vld [vmem:[%s1776_s5 + $0x180] sm:$0xff] }
 0x11e   :  { %v693_v47 = vmax.f32 %v691_v46, 0.0  ;;  %1012 = vmatpush.msra.mxu0 %v1007_v54  ;;  %1087 = vmatpush.msra.mxu2 %v1294_v56 }
 0x120   :  { %762 = vmatmul.f32.vlgmr.msra.gmra.mxu1 %v693_v47  ;;  %835 = vmatmul.f32.vlgmr.msra.gmra.mxu3 %v693_v47 }
 0x121   :  { %889 = vmatmul.f32.vlgmr.msrb.gmra.mxu0 %v692_v37  ;;  %963 = vmatmul.f32.vlgmr.msrb.gmra.mxu2 %v692_v37  ;;  %v1299_v37 = vld [vmem:[%s1776_s5 + $0x190] sm:$0xff] }
 0x122   :  { %1047 = vmatpush.msra.mxu1 %v1280_v48  ;;  %1123 = vmatpush.msra.mxu3 %v1312_v49 }
 0x123   :  { %1013 = vmatpush.msra.mxu0 %v1006_v58  ;;  %1088 = vmatpush.msra.mxu2 %v1293_v60  ;;  %v1323_v60 = vld [vmem:[%s1775_s4] ss:$0 sm:$0xff] }
 0x124   :  { %1048 = vmatpush.msra.mxu1 %v1279_v51  ;;  %1124 = vmatpush.msra.mxu3 %v1311_v53 }
 0x125   :  { %1014 = vmatpush.msra.mxu0 %v1005_v62  ;;  %1089 = vmatpush.msra.mxu2 %v1292_v0  ;;  %v1153_v0 = vld [vmem:[%s1778_s7 + $0x18] sm:$0xff] }
 0x126   :  { %1049 = vmatpush.msra.mxu1 %v1278_v55  ;;  %1125 = vmatpush.msra.mxu3 %v1310_v57 }
 0x127   :  { %1015 = vmatpush.msra.mxu0 %v1004_v2  ;;  %1090 = vmatpush.msra.mxu2 %v1291_v4  ;;  %v1151_v2 = vld [vmem:[%s1778_s7 + $0x8] sm:$0xff]  ;;  %v1186_v4 = vld [vmem:[%s1780_s9 + $0x18] sm:$0xff] }
 0x128   :  { %909 = vmatmul.f32.vlgmr.msrb.gmra.mxu1 %v693_v47  ;;  %983 = vmatmul.f32.vlgmr.msrb.gmra.mxu3 %v693_v47 }
 0x129   :  { %1050 = vmatpush.msra.mxu1 %v1277_v59  ;;  %1126 = vmatpush.msra.mxu3 %v1309_v61 }
 0x12a   :  { %1016 = vmatpush.msra.mxu0 %v1003_v6  ;;  %1091 = vmatpush.msra.mxu2 %v1290_v8 }
 0x12b   :  { %1051 = vmatpush.msra.mxu1 %v1276_v63  ;;  %1127 = vmatpush.msra.mxu3 %v1308_v1  ;;  %v1152_v1 = vld [vmem:[%s1778_s7 + $0x10] sm:$0xff] }
 0x12c   :  { %1017 = vmatpush.msra.mxu0 %v1002_v10  ;;  %1092 = vmatpush.msra.mxu2 %v1289_v12 }
 0x12d   :  { %1052 = vmatpush.msra.mxu1 %v1275_v3  ;;  %1128 = vmatpush.msra.mxu3 %v1307_v5  ;;  %v1150_v3 = vld [vmem:[%s1778_s7] sm:$0xff]  ;;  %v1185_v5 = vld [vmem:[%s1780_s9 + $0x10] sm:$0xff] }
 0x12e   :  { %1018 = vmatpush.msra.mxu0 %v1001_v17  ;;  %1093 = vmatpush.msra.mxu2 %v1288_v19  ;;  %v1184_v19 = vld [vmem:[%s1780_s9 + $0x8] sm:$0xff] }
 0x12f   :  { %1053 = vmatpush.msra.mxu1 %v1274_v7  ;;  %1129 = vmatpush.msra.mxu3 %v1306_v9 }
 0x130   :  { %1019 = vmatpush.msra.mxu0 %v1000_v21  ;;  %1094 = vmatpush.msra.mxu2 %v1287_v13  ;;  %v1216_v21 = vld [vmem:[%s1782_s11 + $0x8] sm:$0xff] }
 0x131   :  { %1054 = vmatpush.msra.mxu1 %v1273_v11  ;;  %1130 = vmatpush.msra.mxu3 %v1305_v15  ;;  %v1324_v11 = vld [vmem:[%s1777_s6] ss:$0 sm:$0xff] }
 0x132   :  { %1020 = vmatpush.msra.mxu0 %v999_v23  ;;  %1095 = vmatpush.msra.mxu2 %v1286_v16  ;;  %v1326_v16 = vld [vmem:[%s1781_s10] ss:$0 sm:$0xff] }
 0x133   :  { %1055 = vmatpush.msra.mxu1 %v1272_v18  ;;  %1131 = vmatpush.msra.mxu3 %v1304_v20  ;;  %v1183_v20 = vld [vmem:[%s1780_s9] sm:$0xff] }
 0x134   :  { %1021 = vmatpush.msra.mxu0 %v998_v26  ;;  %1096 = vmatpush.msra.mxu2 %v1285_v28  ;;  %v1327_v28 = vld [vmem:[%s1783_s12] ss:$0 sm:$0xff] }
 0x135   :  { %1056 = vmatpush.msra.mxu1 %v1271_v22  ;;  %1132 = vmatpush.msra.mxu3 %v1303_v14  ;;  %v1325_v22 = vld [vmem:[%s1779_s8] ss:$0 sm:$0xff] }
 0x136   :  { %1022 = vmatpush.msra.mxu0 %v997_v30  ;;  %1097 = vmatpush.msra.mxu2 %v1284_v32 }
 0x137   :  { %1057 = vmatpush.msra.mxu1 %v1270_v24  ;;  %1133 = vmatpush.msra.mxu3 %v1302_v25  ;;  %v1215_v24 = vld [vmem:[%s1782_s11] sm:$0xff]  ;;  %s1254_s11 = sshll.u32 %s1784_s13, 4  ;;  %s1255_s11 = int_to_ptr.hbm [resolvable:$true] %s1254_s11 }
 0x138   :  { %1023 = vmatpush.msra.mxu0 %v996_v34  ;;  %1098 = vmatpush.msra.mxu2 %v1283_v36 }
 0x139   :  { %1058 = vmatpush.msra.mxu1 %v1269_v27  ;;  %1134 = vmatpush.msra.mxu3 %v1301_v29 }
 0x13a   :  { %1024 = vmatpush.msra.mxu0 %v995_v38  ;;  %1099 = vmatpush.msra.mxu2 %v1282_v40 }
 0x13b   :  { %1059 = vmatpush.msra.mxu1 %v1268_v31  ;;  %1135 = vmatpush.msra.mxu3 %v1300_v33 }
 0x13c   :  { %1025 = vmatpush.msra.mxu0 %v994_v42  ;;  %1100 = vmatpush.msra.mxu2 %v1281_v44 }
 0x13d   :  { %1060 = vmatpush.msra.mxu1 %v1267_v35  ;;  %1136 = vmatpush.msra.mxu3 %v1299_v37 }
 0x13e   :  { %1174 = vmatpush.msrb.mxu0 %v1153_v0  ;;  %1239 = vmatpush.msrb.mxu2 %v1216_v21 }
 0x13f   :  { %1061 = vmatpush.msra.mxu1 %v1266_v39  ;;  %1137 = vmatpush.msra.mxu3 %v1298_v41 }
 0x140   :  { %1175 = vmatpush.msrb.mxu0 %v1152_v1  ;;  %1240 = vmatpush.msrb.mxu2 %v1215_v24 }
 0x141   :  { %1062 = vmatpush.msra.mxu1 %v1265_v43  ;;  %1138 = vmatpush.msra.mxu3 %v1297_v45 }
 0x142   :  { %1176 = vmatpush.msrb.mxu0 %v1151_v2 }
 0x143   :  { %1206 = vmatpush.msrb.mxu1 %v1186_v4 }
 0x144   :  { %1177 = vmatpush.msrb.mxu0 %v1150_v3 }
 0x145   :  { %1207 = vmatpush.msrb.mxu1 %v1185_v5 }
 0x147   :  { %1208 = vmatpush.msrb.mxu1 %v1184_v19 }
 0x149   :  { %1209 = vmatpush.msrb.mxu1 %v1183_v20 }
 0x196   :  { %v743_v46 = vpop.f32.mrf.mxu0 }
 0x19c   :  { %v816_v48 = vpop.f32.mrf.mxu2 }
 0x19d   :  { %v763_v47 = vpop.f32.mrf.mxu1 }
 0x19e   :  { %v764_v52 = vadd.f32 %v763_v47, %v743_v46  ;;  %v890_v53 = vpop.f32.mrf.mxu0 }
 0x1a3   :  { %v836_v49 = vpop.f32.mrf.mxu3 }
 0x1a4   :  { %v837_v50 = vadd.f32 %v836_v49, %v816_v48  ;;  %v964_v56 = vpop.f32.mrf.mxu2 }
 0x1a5   :  { %v910_v51 = vpop.f32.mrf.mxu1 }
 0x1a6   :  { %v839_v54 = vmax.f32 %v764_v52, %v837_v50  ;;  %v911_v55 = vadd.f32 %v910_v51, %v890_v53 }
 0x1a8   :  { %v913_v58 = vmax.f32 %v839_v54, %v911_v55 }
 0x1ab   :  { %v984_v57 = vpop.f32.mrf.mxu3 }
 0x1ac   :  { %v985_v59 = vadd.f32 %v984_v57, %v964_v56 }
 0x1ae   :  { %v987_v61 = vmax.f32 %v913_v58, %v985_v59 }
 0x1b0   :  { %v992_v62 = vadd.f32 %v1323_v60, %v987_v61 }
 0x1b2   :  { %v993_v63 = vmax.f32 %v992_v62, 0.0 }
 0x1b4   :  { %1026 = vmatmul.f32.vlgmr.msra.gmra.mxu0 %v993_v63  ;;  %1063 = vmatmul.f32.vlgmr.msra.gmra.mxu1 %v993_v63 }
 0x1b5   :  { %1101 = vmatmul.f32.vlgmr.msra.gmra.mxu2 %v993_v63  ;;  %1139 = vmatmul.f32.vlgmr.msra.gmra.mxu3 %v993_v63 }
 0x231   :  { %v1027_v6 = vpop.f32.mrf.mxu0  ;;  %v1064_v7 = vpop.f32.mrf.mxu1 }
 0x232   :  { %v1067_v8 = vmax.f32 %v1027_v6, %v1064_v7 }
 0x238   :  { %v1102_v9 = vpop.f32.mrf.mxu2  ;;  %v1140_v12 = vpop.f32.mrf.mxu3 }
 0x239   :  { %v1105_v10 = vmax.f32 %v1067_v8, %v1102_v9 }
 0x23b   :  { %v1143_v15 = vmax.f32 %v1105_v10, %v1140_v12 }
 0x23d   :  { %v1148_v17 = vadd.f32 %v1324_v11, %v1143_v15 }
 0x23f   :  { %v1149_v18 = vmax.f32 %v1148_v17, 0.0 }
 0x241   :  { %1313 = vmatmul.msk.f32.vlgmr.msrb.gmra.mxu0 %vm1158_vm0, %v1149_v18 }
 0x2be   :  { %v1179_v13 = vpop.f32.mrf.mxu0 }
 0x2bf   :  { %v1180_v14 = vadd.f32 %v1325_v22, %v1179_v13 }
 0x2c1   :  { %v1182_v23 = vmax.f32 %v1180_v14, 0.0 }
 0x2c3   :  { %1314 = vmatmul.msk.f32.vlgmr.msrb.gmra.mxu1 %vm1158_vm0, %v1182_v23 }
 0x340   :  { %v1211_v25 = vpop.f32.mrf.mxu1 }
 0x341   :  { %v1212_v26 = vadd.f32 %v1326_v16, %v1211_v25 }
 0x343   :  { %v1214_v27 = vmax.f32 %v1212_v26, 0.0 }
 0x345   :  { %1315 = vmatmul.msk.f32.vlgmr.msrb.gmra.mxu2 %vm1221_vm1, %v1214_v27 }
 0x3c8   :  { %v1242_v29 = vpop.f32.mrf.mxu2 }
 0x3c9   :  { %v1243_v30 = vadd.f32 %v1327_v28, %v1242_v29 }
 0x3cb   :  { %1246 = vst.msk [vmem:[#allocation7] sm:$0x3] %vm1245_vm2, %v1243_v30 }
 0x3cc   :  { %1257 = dma.vmem_to_hbm [thread:$0]  %s1253_s27, 32, %s1255_s11, [#allocation4]  }
 0x3cd   :  { %1404 = dma.done.wait [#allocation4], 32  }
 0x3ce   :  { %1405 = vsyncadd [#allocation4], 4294967264 }
 0x3cf   :  { %1262 = vsyncpa [#allocation3], 1 }
 0x3d0   :  { %1263 = vsyncpa [#allocation6], 1 }
 0x3d1   :  { %1264 = vsyncpa [#allocation4], 1 }

</bundles_post_ra>
